<compile_context>
chip_gen: v6e
topology: v6e:2x2x1
jax: 0.10.0
libtpu: 0.0.40
codegen_flags: <defaults>
</compile_context>

<pallas_src>
import functools

import jax
import jax.numpy as jnp
from jax import lax
from jax.experimental import pallas as pl
from jax.experimental.pallas import tpu as pltpu


# ----------------------------------------------------------------------------
# Kernel
# ----------------------------------------------------------------------------
def _generator_kernel(
    temperature, n_vocabs, vocab_tile, goal_size,
    # --- scalar prefetch (SMEM) ---
    ids_ref,
    # --- inputs (VMEM) ---
    f_t_ref, h_m_ref, c_m_ref, h_w_ref, c_w_ref,
    last_goal_ref, real_goal_ref, labels_ref,
    m_w_ref, m_b_ref, fcm_w_ref, fcm_b_ref,
    emb_ref, w_w_ref, w_b_ref, gchg_ref,
    fcw_w_ref, gumbel_ref,
    # --- outputs ---
    x_tp1_ref, h_m_o_ref, c_m_o_ref, h_w_o_ref, c_w_o_ref,
    last_goal_o_ref, sub_goal_o_ref, logits_o_ref, m_o_ref, l_o_ref,
    # --- scratch ---
    z_sc, bk_sc,
):
    f32 = jnp.float32
    bf16 = jnp.bfloat16
    B, H = h_m_ref.shape
    Gs = goal_size
    j = pl.program_id(0)

    def lstm_cell(x_cat, c, w_ref, b_ref):
        # PyTorch LSTMCell, gate order i, f, g, o; fused [x, labels, h] @ W.
        # bf16 operands, f32 accumulation.
        gates = jnp.dot(x_cat.astype(bf16), w_ref[...],
                        preferred_element_type=f32) + b_ref[...]
        # NOTE: keep H a multiple of 128 in production so these gate slices
        # are lane-aligned; at H=32 they are cheap sub-vreg selects.
        i = jax.nn.sigmoid(gates[:, 0:H])
        f = jax.nn.sigmoid(gates[:, H:2 * H])
        g = jnp.tanh(gates[:, 2 * H:3 * H])
        o = jax.nn.sigmoid(gates[:, 3 * H:4 * H])
        c_new = f * c + i * g
        return o * jnp.tanh(c_new), c_new

    def renorm_rows(x, maxnorm=1.0):
        # torch.renorm(x, p=2, dim=0, maxnorm): per-row L2 clip.
        sumsq = jnp.sum(x * x, axis=1, keepdims=True)
        inv_norm = lax.rsqrt(jnp.maximum(sumsq, 1e-30))           # EUP
        scale = jnp.where(sumsq > maxnorm * maxnorm, maxnorm * inv_norm, 1.0)
        return x * scale

    # ------------------------------------------------------------------
    # Grid step 0: Manager + Worker recurrences, goals, matmul LHS, init.
    # ------------------------------------------------------------------
    @pl.when(j == 0)
    def _setup():
        labels = labels_ref[...]

        # ---------------- Manager ----------------
        x_m = jnp.concatenate([f_t_ref[...], labels, h_m_ref[...]], axis=1)
        h_m1, c_m1 = lstm_cell(x_m, c_m_ref[...], m_w_ref, m_b_ref)
        sub_goal = jnp.dot(h_m1.astype(bf16), fcm_w_ref[...],
                           preferred_element_type=f32) + fcm_b_ref[...]
        sub_goal = renorm_rows(sub_goal)
        h_m_o_ref[...] = h_m1
        c_m_o_ref[...] = c_m1
        sub_goal_o_ref[...] = sub_goal
        last_goal_o_ref[...] = last_goal_ref[...] + sub_goal

        # ---------------- Worker ----------------
        # embedding lookup: per-row gather with SMEM ids (no one-hot matmul)
        n_rows = emb_ref.shape[0]                                 # V + 1
        rows = []
        for b in range(B):
            idx = jnp.clip(ids_ref[b], 0, n_rows - 1)
            rows.append(emb_ref[pl.ds(idx, 1), :])                # (1, E)
        x_emb = jnp.concatenate(rows, axis=0)                     # (B, E)
        x_w = jnp.concatenate([x_emb, labels, h_w_ref[...]], axis=1)
        h_w1, c_w1 = lstm_cell(x_w, c_w_ref[...], w_w_ref, w_b_ref)
        h_w_o_ref[...] = h_w1
        c_w_o_ref[...] = c_w1

        # goal contraction vector + matmul LHS  z = [h_w ⊗ w_t | w_t]
        w_t = jnp.dot(real_goal_ref[...], gchg_ref[...],
                      preferred_element_type=f32)                 # (B, Gs)
        w_t = renorm_rows(w_t)
        parts = [h_w1 * w_t[:, g:g + 1] for g in range(Gs)]       # (B, H) each
        parts.append(w_t)                       # folds the fc bias into the matmul
        z_sc[...] = jnp.concatenate(parts, axis=1)                # (B, Gs*H+Gs)

        # online-softmax / sampling accumulators
        m_o_ref[...] = jnp.full(m_o_ref.shape, -jnp.inf, f32)
        l_o_ref[...] = jnp.zeros(l_o_ref.shape, f32)
        bk_sc[...] = jnp.full(bk_sc.shape, -jnp.inf, f32)
        x_tp1_ref[...] = jnp.zeros(x_tp1_ref.shape, jnp.int32)

    # ------------------------------------------------------------------
    # Every step: one vocab tile -> logits, online softmax stats, argmax.
    # ------------------------------------------------------------------
    z = z_sc[...].astype(bf16)
    logits = jnp.dot(z, fcw_w_ref[...], preferred_element_type=f32)  # (B, Nt)
    scaled = jnp.float32(temperature) * logits
    cols = j * vocab_tile + lax.broadcasted_iota(jnp.int32, scaled.shape, 1)
    scaled = jnp.where(cols < n_vocabs, scaled, -jnp.inf)            # mask pad
    logits_o_ref[...] = scaled                                       # lane-dense store

    # online softmax statistics (resident (B,1) outputs act as accumulators)
    m_prev = m_o_ref[...]
    m_new = jnp.maximum(m_prev, jnp.max(scaled, axis=1, keepdims=True))
    e = jnp.exp(scaled - m_new)
    l_o_ref[...] = (jnp.exp(m_prev - m_new) * l_o_ref[...]
                    + jnp.sum(e, axis=1, keepdims=True))
    m_o_ref[...] = m_new

    # running Gumbel-argmax == Categorical(softmax(scaled)).sample()
    key = scaled + gumbel_ref[...]
    k_max = jnp.max(key, axis=1, keepdims=True)
    tile_arg = jnp.min(jnp.where(key >= k_max, cols, jnp.int32(2 ** 30)),
                       axis=1, keepdims=True)
    better = k_max > bk_sc[...]
    x_tp1_ref[...] = jnp.where(better, tile_arg, x_tp1_ref[...])
    bk_sc[...] = jnp.maximum(bk_sc[...], k_max)


# ----------------------------------------------------------------------------
# Parameter construction (deterministic; mimics nn.init.normal_(std=0.1))
# ----------------------------------------------------------------------------
def init_params(key, n_vocabs, n_labels, hidden, goal_out, goal_size):
    H, Go, L, Gs, V = hidden, goal_out, n_labels, goal_size, n_vocabs
    E = hidden  # Worker embed_dim == hidden_size in Generator.__init__
    ks = jax.random.split(key, 12)
    n = lambda k, shape: 0.1 * jax.random.normal(k, shape, jnp.float32)

    p = {}
    # Manager LSTMCell(Go+L, H)
    p["m_w_ih"] = n(ks[0], (4 * H, Go + L))
    p["m_w_hh"] = n(ks[1], (4 * H, H))
    p["m_b_ih"] = n(ks[2], (4 * H,))
    p["m_b_hh"] = n(ks[3], (4 * H,))
    # Manager fc(H, Go)
    p["m_fc_w"] = n(ks[4], (Go, H))
    p["m_fc_b"] = n(ks[5], (Go,))
    # Worker
    p["w_emb"] = n(ks[6], (V + 1, E))
    p["w_w_ih"] = n(ks[7], (4 * H, E + L))
    p["w_w_hh"] = n(ks[8], (4 * H, H))
    p["w_b_ih"] = n(ks[9], (4 * H,))
    p["w_b_hh"] = n(ks[10], (4 * H,))
    kw = jax.random.split(ks[11], 3)
    p["w_fc_w"] = n(kw[0], (Gs * V, H))
    p["w_fc_b"] = n(kw[1], (Gs * V,))
    p["goal_change"] = n(kw[2], (Go, Gs))
    return p


# ----------------------------------------------------------------------------
# One-time weight layout / cast (hoisted out of the per-token forward)
# ----------------------------------------------------------------------------
def prepare_params(params, vocab_tile=128):
    f32, bf16 = jnp.float32, jnp.bfloat16
    H = params["m_w_hh"].shape[1]
    Go = params["m_fc_w"].shape[0]
    L = params["m_w_ih"].shape[1] - Go
    Vp1, E = params["w_emb"].shape
    V = Vp1 - 1
    Gs = params["goal_change"].shape[1]
    n_tiles = max(1, (V + vocab_tile - 1) // vocab_tile)
    Vpad = n_tiles * vocab_tile

    # Manager: fused [W_if; W_il; W_hh] -> (Go+L+H, 4H), bf16
    m_w = jnp.concatenate([params["m_w_ih"].T, params["m_w_hh"].T],
                          axis=0).astype(bf16)
    m_b = (params["m_b_ih"] + params["m_b_hh"]).reshape(1, 4 * H).astype(f32)
    fcm_w = params["m_fc_w"].T.astype(bf16)                       # (H, Go)
    fcm_b = params["m_fc_b"].reshape(1, Go).astype(f32)

    # Worker: embedding kept f32 (dynamic row gather); fused LSTM weight bf16.
    emb = params["w_emb"].astype(f32)                             # (V+1, E)
    w_w = jnp.concatenate([params["w_w_ih"].T, params["w_w_hh"].T],
                          axis=0).astype(bf16)                    # (E+L+H, 4H)
    w_b = (params["w_b_ih"] + params["w_b_hh"]).reshape(1, 4 * H).astype(f32)

    # Worker fc folded with the goal contraction: rows ordered g*H+h, bias rows
    # appended at Gs*H+g, vocab padded to a tile multiple, bf16.
    W2 = (params["w_fc_w"].reshape(V, Gs, H)
          .transpose(1, 2, 0).reshape(Gs * H, V))
    B2 = params["w_fc_b"].reshape(V, Gs).T                        # (Gs, V)
    fcw_w = jnp.concatenate([W2, B2], axis=0)                     # (Gs*H+Gs, V)
    fcw_w = jnp.pad(fcw_w, ((0, 0), (0, Vpad - V))).astype(bf16)
    gchg = params["goal_change"].astype(f32)                      # (Go, Gs)

    return dict(m_w=m_w, m_b=m_b, fcm_w=fcm_w, fcm_b=fcm_b,
                emb=emb, w_w=w_w, w_b=w_b, fcw_w=fcw_w, gchg=gchg,
                dims=dict(V=V, Vpad=Vpad, vocab_tile=vocab_tile,
                          n_tiles=n_tiles, H=H, Go=Go, L=L, E=E, Gs=Gs))


# ----------------------------------------------------------------------------
# Forward wrapper (one generated token)
# ----------------------------------------------------------------------------
def generator_forward(prep, x_t, f_t, h_m, c_m, h_w, c_w,
                      last_goal, real_goal, labels, t, rng_key,
                      temperature=1.0):
    d = prep["dims"]
    V, Vpad, Nt, T = d["V"], d["Vpad"], d["vocab_tile"], d["n_tiles"]
    H, Go, Gs = d["H"], d["Go"], d["Gs"]
    B = h_m.shape[0]
    f32 = jnp.float32
    K = Gs * H + Gs

    ids = x_t.reshape(B).astype(jnp.int32)
    # Gumbel noise generated outside the kernel (pltpu.prng_* has no
    # CPU/interpret lowering); streamed tile-by-tile like the fc weight.
    gumbel = jax.random.gumbel(rng_key, (B, Vpad), f32)

    kernel = functools.partial(_generator_kernel,
                               float(temperature), V, Nt, Gs)

    def const_map(j, ids):
        return (0, 0)

    small_inputs = (f_t, h_m, c_m, h_w, c_w, last_goal, real_goal, labels,
                    prep["m_w"], prep["m_b"], prep["fcm_w"], prep["fcm_b"],
                    prep["emb"], prep["w_w"], prep["w_b"], prep["gchg"])
    in_specs = [pl.BlockSpec(a.shape, const_map) for a in small_inputs]
    in_specs.append(pl.BlockSpec((K, Nt), lambda j, ids: (0, j)))   # fc weight tile
    in_specs.append(pl.BlockSpec((B, Nt), lambda j, ids: (0, j)))   # gumbel tile

    out_shape = (
        jax.ShapeDtypeStruct((B, 1), jnp.int32),    # x_tp1 (sample)
        jax.ShapeDtypeStruct((B, H), f32),          # h_m_tp1
        jax.ShapeDtypeStruct((B, H), f32),          # c_m_tp1
        jax.ShapeDtypeStruct((B, H), f32),          # h_w_tp1
        jax.ShapeDtypeStruct((B, H), f32),          # c_w_tp1
        jax.ShapeDtypeStruct((B, Go), f32),         # last_goal_temp
        jax.ShapeDtypeStruct((B, Go), f32),         # sub_goal
        jax.ShapeDtypeStruct((B, Vpad), f32),       # scaled logits (streamed)
        jax.ShapeDtypeStruct((B, 1), f32),          # softmax running max (final)
        jax.ShapeDtypeStruct((B, 1), f32),          # softmax denom (final)
    )
    out_specs = [
        pl.BlockSpec((B, 1), const_map),
        pl.BlockSpec((B, H), const_map),
        pl.BlockSpec((B, H), const_map),
        pl.BlockSpec((B, H), const_map),
        pl.BlockSpec((B, H), const_map),
        pl.BlockSpec((B, Go), const_map),
        pl.BlockSpec((B, Go), const_map),
        pl.BlockSpec((B, Nt), lambda j, ids: (0, j)),
        pl.BlockSpec((B, 1), const_map),
        pl.BlockSpec((B, 1), const_map),
    ]

    grid_spec = pltpu.PrefetchScalarGridSpec(
        num_scalar_prefetch=1,
        grid=(T,),
        in_specs=in_specs,
        out_specs=out_specs,
        scratch_shapes=[pltpu.VMEM((B, K), f32),    # matmul LHS z
                        pltpu.VMEM((B, 1), f32)],   # running best Gumbel key
    )

    outs = pl.pallas_call(
        kernel,
        out_shape=out_shape,
        grid_spec=grid_spec,
        compiler_params=pltpu.CompilerParams(
            dimension_semantics=("arbitrary",),     # vocab axis is a reduction
            vmem_limit_bytes=48 * 1024 * 1024),
    )(ids, *small_inputs, prep["fcw_w"], gumbel)

    (x_tp1, h_m1, c_m1, h_w1, c_w1, last_goal_temp, sub_goal,
     scaled_logits, m_fin, l_fin) = outs

    # Final elementwise normalization; statistics (m, l) come from the kernel.
    probs = jnp.exp(scaled_logits[:, :V] - m_fin) / l_fin

    # real_goal and t+1 are pass-through glue, as in the PyTorch forward
    return (x_tp1[:, 0], h_m1, c_m1, h_w1, c_w1,
            last_goal_temp, real_goal, sub_goal, probs, t + 1)


# ----------------------------------------------------------------------------
# Demo
# ----------------------------------------------------------------------------
if __name__ == "__main__":
    B = 8            # batch_size
    V = 300          # n_vocabs (padded to 384 -> 3 vocab tiles of 128)
    L = 8            # n_labels
    H = 32           # hidden_size (== worker embed_dim)
    Go = 32          # goal_out_size (== total_n_filters)
    Gs = 16          # goal_size

    root = jax.random.PRNGKey(0)
    k_par, k_x, k_f, k_lg, k_rg, k_lab, k_g = jax.random.split(root, 7)

    params = init_params(k_par, V, L, H, Go, Gs)
    prep = prepare_params(params, vocab_tile=128)   # one-time layout/cast

    x_t = jax.random.randint(k_x, (B,), 0, V + 1, dtype=jnp.int32)
    f_t = jax.random.normal(k_f, (B, Go), jnp.float32)
    h_m = jnp.zeros((B, H), jnp.float32)   # init_hidden
    c_m = jnp.zeros((B, H), jnp.float32)
    h_w = jnp.zeros((B, H), jnp.float32)
    c_w = jnp.zeros((B, H), jnp.float32)
    last_goal = jax.random.normal(k_lg, (B, Go), jnp.float32)
    real_goal = jax.random.normal(k_rg, (B, Go), jnp.float32)
    label_ids = jax.random.randint(k_lab, (B,), 0, L)
    labels = jax.nn.one_hot(label_ids, L, dtype=jnp.float32)

    outs = generator_forward(prep, x_t, f_t, h_m, c_m, h_w, c_w,
                             last_goal, real_goal, labels, t=0,
                             rng_key=k_g, temperature=1.0)
    outs = jax.block_until_ready(outs)

    (x_tp1, h_m1, c_m1, h_w1, c_w1, last_goal_t, rg, sub_goal, probs, t1) = outs
    assert x_tp1.shape == (B,)
    assert probs.shape == (B, V)
    assert h_m1.shape == (B, H) and c_w1.shape == (B, H)
    assert sub_goal.shape == (B, Go) and last_goal_t.shape == (B, Go)
    assert bool(jnp.all(jnp.isfinite(probs)))
    assert bool(jnp.allclose(jnp.sum(probs, axis=1), 1.0, atol=1e-3))
    assert bool(jnp.all((x_tp1 >= 0) & (x_tp1 < V)))
    assert t1 == 1
    print("KERNEL_OK")
</pallas_src>

<mosaic_0001>
module attributes {stable_mosaic.version = 11 : i64} {
  func.func @_generator_kernel(%arg0: i32, %arg1: memref<8xi32, #tpu.memory_space<smem>>, %arg2: memref<8x32xf32, #tpu.memory_space<vmem>>, %arg3: memref<8x32xf32, #tpu.memory_space<vmem>>, %arg4: memref<8x32xf32, #tpu.memory_space<vmem>>, %arg5: memref<8x32xf32, #tpu.memory_space<vmem>>, %arg6: memref<8x32xf32, #tpu.memory_space<vmem>>, %arg7: memref<8x32xf32, #tpu.memory_space<vmem>>, %arg8: memref<8x32xf32, #tpu.memory_space<vmem>>, %arg9: memref<8x8xf32, #tpu.memory_space<vmem>>, %arg10: memref<72x128xbf16, #tpu.memory_space<vmem>>, %arg11: memref<1x128xf32, #tpu.memory_space<vmem>>, %arg12: memref<32x32xbf16, #tpu.memory_space<vmem>>, %arg13: memref<1x32xf32, #tpu.memory_space<vmem>>, %arg14: memref<301x32xf32, #tpu.memory_space<vmem>>, %arg15: memref<72x128xbf16, #tpu.memory_space<vmem>>, %arg16: memref<1x128xf32, #tpu.memory_space<vmem>>, %arg17: memref<32x16xf32, #tpu.memory_space<vmem>>, %arg18: memref<528x128xbf16, #tpu.memory_space<vmem>>, %arg19: memref<8x128xf32, #tpu.memory_space<vmem>>, %arg20: memref<8x1xi32, #tpu.memory_space<vmem>>, %arg21: memref<8x32xf32, #tpu.memory_space<vmem>>, %arg22: memref<8x32xf32, #tpu.memory_space<vmem>>, %arg23: memref<8x32xf32, #tpu.memory_space<vmem>>, %arg24: memref<8x32xf32, #tpu.memory_space<vmem>>, %arg25: memref<8x32xf32, #tpu.memory_space<vmem>>, %arg26: memref<8x32xf32, #tpu.memory_space<vmem>>, %arg27: memref<8x128xf32, #tpu.memory_space<vmem>>, %arg28: memref<8x1xf32, #tpu.memory_space<vmem>>, %arg29: memref<8x1xf32, #tpu.memory_space<vmem>>, %arg30: memref<8x528xf32, #tpu.memory_space<vmem>>, %arg31: memref<8x1xf32, #tpu.memory_space<vmem>>) attributes {dimension_semantics = [#tpu.dimension_semantics<arbitrary>], iteration_bounds = array<i64: 3>, scalar_prefetch = 1 : i64, scratch_operands = 2 : i64, tpu.core_type = #tpu.core_type<tc>, window_params = [{pipeline_mode = #tpu.pipeline_mode<synchronous>, transform_indices = @transform_0, window_bounds = array<i64: 8, 32>}, {pipeline_mode = #tpu.pipeline_mode<synchronous>, transform_indices = @transform_1, window_bounds = array<i64: 8, 32>}, {pipeline_mode = #tpu.pipeline_mode<synchronous>, transform_indices = @transform_2, window_bounds = array<i64: 8, 32>}, {pipeline_mode = #tpu.pipeline_mode<synchronous>, transform_indices = @transform_3, window_bounds = array<i64: 8, 32>}, {pipeline_mode = #tpu.pipeline_mode<synchronous>, transform_indices = @transform_4, window_bounds = array<i64: 8, 32>}, {pipeline_mode = #tpu.pipeline_mode<synchronous>, transform_indices = @transform_5, window_bounds = array<i64: 8, 32>}, {pipeline_mode = #tpu.pipeline_mode<synchronous>, transform_indices = @transform_6, window_bounds = array<i64: 8, 32>}, {pipeline_mode = #tpu.pipeline_mode<synchronous>, transform_indices = @transform_7, window_bounds = array<i64: 8, 8>}, {pipeline_mode = #tpu.pipeline_mode<synchronous>, transform_indices = @transform_8, window_bounds = array<i64: 72, 128>}, {pipeline_mode = #tpu.pipeline_mode<synchronous>, transform_indices = @transform_9, window_bounds = array<i64: 1, 128>}, {pipeline_mode = #tpu.pipeline_mode<synchronous>, transform_indices = @transform_10, window_bounds = array<i64: 32, 32>}, {pipeline_mode = #tpu.pipeline_mode<synchronous>, transform_indices = @transform_11, window_bounds = array<i64: 1, 32>}, {pipeline_mode = #tpu.pipeline_mode<synchronous>, transform_indices = @transform_12, window_bounds = array<i64: 301, 32>}, {pipeline_mode = #tpu.pipeline_mode<synchronous>, transform_indices = @transform_13, window_bounds = array<i64: 72, 128>}, {pipeline_mode = #tpu.pipeline_mode<synchronous>, transform_indices = @transform_14, window_bounds = array<i64: 1, 128>}, {pipeline_mode = #tpu.pipeline_mode<synchronous>, transform_indices = @transform_15, window_bounds = array<i64: 32, 16>}, {transform_indices = @transform_16, window_bounds = array<i64: 528, 128>}, {transform_indices = @transform_17, window_bounds = array<i64: 8, 128>}, {pipeline_mode = #tpu.pipeline_mode<synchronous>, transform_indices = @transform_18, window_bounds = array<i64: 8, 1>}, {pipeline_mode = #tpu.pipeline_mode<synchronous>, transform_indices = @transform_19, window_bounds = array<i64: 8, 32>}, {pipeline_mode = #tpu.pipeline_mode<synchronous>, transform_indices = @transform_20, window_bounds = array<i64: 8, 32>}, {pipeline_mode = #tpu.pipeline_mode<synchronous>, transform_indices = @transform_21, window_bounds = array<i64: 8, 32>}, {pipeline_mode = #tpu.pipeline_mode<synchronous>, transform_indices = @transform_22, window_bounds = array<i64: 8, 32>}, {pipeline_mode = #tpu.pipeline_mode<synchronous>, transform_indices = @transform_23, window_bounds = array<i64: 8, 32>}, {pipeline_mode = #tpu.pipeline_mode<synchronous>, transform_indices = @transform_24, window_bounds = array<i64: 8, 32>}, {transform_indices = @transform_25, window_bounds = array<i64: 8, 128>}, {pipeline_mode = #tpu.pipeline_mode<synchronous>, transform_indices = @transform_26, window_bounds = array<i64: 8, 1>}, {pipeline_mode = #tpu.pipeline_mode<synchronous>, transform_indices = @transform_27, window_bounds = array<i64: 8, 1>}]} {
    %c0_i32 = arith.constant 0 : i32
    %0 = arith.cmpi eq, %arg0, %c0_i32 : i32
    %1 = arith.extui %0 : i1 to i32
    %c0_i32_0 = arith.constant 0 : i32
    %2 = arith.cmpi ne, %1, %c0_i32_0 : i32
    scf.if %2 {
      %c0_32 = arith.constant 0 : index
      %c0_33 = arith.constant 0 : index
      %52 = vector.load %arg9[%c0_32, %c0_33] : memref<8x8xf32, #tpu.memory_space<vmem>>, vector<8x8xf32>
      %c0_34 = arith.constant 0 : index
      %c0_35 = arith.constant 0 : index
      %53 = vector.load %arg2[%c0_34, %c0_35] : memref<8x32xf32, #tpu.memory_space<vmem>>, vector<8x32xf32>
      %c0_36 = arith.constant 0 : index
      %c0_37 = arith.constant 0 : index
      %54 = vector.load %arg3[%c0_36, %c0_37] : memref<8x32xf32, #tpu.memory_space<vmem>>, vector<8x32xf32>
      %55 = tpu.concatenate %53, %52, %54 in 1 : vector<8x32xf32>, vector<8x8xf32>, vector<8x32xf32> -> vector<8x72xf32>
      %c0_38 = arith.constant 0 : index
      %c0_39 = arith.constant 0 : index
      %56 = vector.load %arg4[%c0_38, %c0_39] : memref<8x32xf32, #tpu.memory_space<vmem>>, vector<8x32xf32>
      %57 = arith.truncf %55 : vector<8x72xf32> to vector<8x72xbf16>
      %c0_40 = arith.constant 0 : index
      %c0_41 = arith.constant 0 : index
      %58 = vector.load %arg10[%c0_40, %c0_41] : memref<72x128xbf16, #tpu.memory_space<vmem>>, vector<72x128xbf16>
      %cst_42 = arith.constant dense<0.000000e+00> : vector<8x128xf32>
      %59 = tpu.matmul %57, %58, %cst_42 {dimension_numbers = #tpu.dot_dimension_numbers<[1], [0], [0], [1], [0, 0, 1, 1], [], []>} : vector<8x72xbf16>, vector<72x128xbf16>, vector<8x128xf32> -> vector<8x128xf32>
      %c0_43 = arith.constant 0 : index
      %c0_44 = arith.constant 0 : index
      %60 = vector.load %arg11[%c0_43, %c0_44] : memref<1x128xf32, #tpu.memory_space<vmem>>, vector<1x128xf32>
      %61 = vector.broadcast %60 : vector<1x128xf32> to vector<8x128xf32>
      %62 = arith.addf %59, %61 : vector<8x128xf32>
      %63 = vector.extract_strided_slice %62 {offsets = [0, 0], sizes = [8, 32], strides = [1, 1]} : vector<8x128xf32> to vector<8x32xf32>
      %64 = arith.negf %63 : vector<8x32xf32>
      %65 = math.exp %64 : vector<8x32xf32>
      %cst_45 = arith.constant 1.000000e+00 : f32
      %66 = vector.broadcast %cst_45 : f32 to vector<8x32xf32>
      %67 = arith.addf %66, %65 : vector<8x32xf32>
      %68 = arith.divf %66, %67 : vector<8x32xf32>
      %69 = vector.extract_strided_slice %62 {offsets = [0, 32], sizes = [8, 32], strides = [1, 1]} : vector<8x128xf32> to vector<8x32xf32>
      %70 = arith.negf %69 : vector<8x32xf32>
      %71 = math.exp %70 : vector<8x32xf32>
      %cst_46 = arith.constant 1.000000e+00 : f32
      %72 = vector.broadcast %cst_46 : f32 to vector<8x32xf32>
      %73 = arith.addf %72, %71 : vector<8x32xf32>
      %74 = arith.divf %72, %73 : vector<8x32xf32>
      %75 = vector.extract_strided_slice %62 {offsets = [0, 64], sizes = [8, 32], strides = [1, 1]} : vector<8x128xf32> to vector<8x32xf32>
      %76 = math.tanh %75 : vector<8x32xf32>
      %77 = vector.extract_strided_slice %62 {offsets = [0, 96], sizes = [8, 32], strides = [1, 1]} : vector<8x128xf32> to vector<8x32xf32>
      %78 = arith.negf %77 : vector<8x32xf32>
      %79 = math.exp %78 : vector<8x32xf32>
      %cst_47 = arith.constant 1.000000e+00 : f32
      %80 = vector.broadcast %cst_47 : f32 to vector<8x32xf32>
      %81 = arith.addf %80, %79 : vector<8x32xf32>
      %82 = arith.divf %80, %81 : vector<8x32xf32>
      %83 = arith.mulf %74, %56 : vector<8x32xf32>
      %84 = arith.mulf %68, %76 : vector<8x32xf32>
      %85 = arith.addf %83, %84 : vector<8x32xf32>
      %86 = math.tanh %85 : vector<8x32xf32>
      %87 = arith.mulf %82, %86 : vector<8x32xf32>
      %88 = arith.truncf %87 : vector<8x32xf32> to vector<8x32xbf16>
      %c0_48 = arith.constant 0 : index
      %c0_49 = arith.constant 0 : index
      %89 = vector.load %arg12[%c0_48, %c0_49] : memref<32x32xbf16, #tpu.memory_space<vmem>>, vector<32x32xbf16>
      %cst_50 = arith.constant dense<0.000000e+00> : vector<8x32xf32>
      %90 = tpu.matmul %88, %89, %cst_50 {dimension_numbers = #tpu.dot_dimension_numbers<[1], [0], [0], [1], [0, 0, 1, 1], [], []>} : vector<8x32xbf16>, vector<32x32xbf16>, vector<8x32xf32> -> vector<8x32xf32>
      %c0_51 = arith.constant 0 : index
      %c0_52 = arith.constant 0 : index
      %91 = vector.load %arg13[%c0_51, %c0_52] : memref<1x32xf32, #tpu.memory_space<vmem>>, vector<1x32xf32>
      %92 = vector.broadcast %91 : vector<1x32xf32> to vector<8x32xf32>
      %93 = arith.addf %90, %92 : vector<8x32xf32>
      %94 = arith.mulf %93, %93 : vector<8x32xf32>
      %cst_53 = arith.constant dense<0.000000e+00> : vector<8xf32>
      %95 = vector.multi_reduction <add>, %94, %cst_53 [1] : vector<8x32xf32> to vector<8xf32>
      %96 = vector.shape_cast %95 : vector<8xf32> to vector<8x1xf32>
      %cst_54 = arith.constant 1.000000e-30 : f32
      %97 = vector.broadcast %cst_54 : f32 to vector<8x1xf32>
      %98 = arith.maximumf %96, %97 : vector<8x1xf32>
      %99 = math.rsqrt %98 : vector<8x1xf32>
      %cst_55 = arith.constant 1.000000e+00 : f32
      %100 = vector.broadcast %cst_55 : f32 to vector<8x1xf32>
      %101 = arith.cmpf ogt, %96, %100 : vector<8x1xf32>
      %cst_56 = arith.constant 1.000000e+00 : f32
      %102 = vector.broadcast %cst_56 : f32 to vector<8x1xf32>
      %103 = arith.mulf %102, %99 : vector<8x1xf32>
      %cst_57 = arith.constant 1.000000e+00 : f32
      %104 = vector.broadcast %cst_57 : f32 to vector<8x1xf32>
      %105 = arith.select %101, %103, %104 : vector<8x1xi1>, vector<8x1xf32>
      %106 = vector.broadcast %105 : vector<8x1xf32> to vector<8x32xf32>
      %107 = arith.mulf %93, %106 : vector<8x32xf32>
      %c0_58 = arith.constant 0 : index
      %c0_59 = arith.constant 0 : index
      %108 = vector.load %arg21[%c0_58, %c0_59] : memref<8x32xf32, #tpu.memory_space<vmem>>, vector<8x32xf32>
      tpu.vector_store %arg21[%c0_58, %c0_59], %87 {strides = array<i32>} : memref<8x32xf32, #tpu.memory_space<vmem>>, vector<8x32xf32>,
      %c0_60 = arith.constant 0 : index
      %c0_61 = arith.constant 0 : index
      %109 = vector.load %arg22[%c0_60, %c0_61] : memref<8x32xf32, #tpu.memory_space<vmem>>, vector<8x32xf32>
      tpu.vector_store %arg22[%c0_60, %c0_61], %85 {strides = array<i32>} : memref<8x32xf32, #tpu.memory_space<vmem>>, vector<8x32xf32>,
      %c0_62 = arith.constant 0 : index
      %c0_63 = arith.constant 0 : index
      %110 = vector.load %arg26[%c0_62, %c0_63] : memref<8x32xf32, #tpu.memory_space<vmem>>, vector<8x32xf32>
      tpu.vector_store %arg26[%c0_62, %c0_63], %107 {strides = array<i32>} : memref<8x32xf32, #tpu.memory_space<vmem>>, vector<8x32xf32>,
      %c0_64 = arith.constant 0 : index
      %c0_65 = arith.constant 0 : index
      %111 = vector.load %arg7[%c0_64, %c0_65] : memref<8x32xf32, #tpu.memory_space<vmem>>, vector<8x32xf32>
      %112 = arith.addf %111, %107 : vector<8x32xf32>
      %c0_66 = arith.constant 0 : index
      %c0_67 = arith.constant 0 : index
      %113 = vector.load %arg25[%c0_66, %c0_67] : memref<8x32xf32, #tpu.memory_space<vmem>>, vector<8x32xf32>
      tpu.vector_store %arg25[%c0_66, %c0_67], %112 {strides = array<i32>} : memref<8x32xf32, #tpu.memory_space<vmem>>, vector<8x32xf32>,
      %c0_68 = arith.constant 0 : index
      %114 = memref.load %arg1[%c0_68] : memref<8xi32, #tpu.memory_space<smem>>
      %c0_i32_69 = arith.constant 0 : i32
      %c300_i32_70 = arith.constant 300 : i32
      %115 = arith.maxsi %c0_i32_69, %114 : i32
      %116 = arith.minsi %c300_i32_70, %115 : i32
      %117 = arith.index_cast %116 : i32 to index
      %c0_71 = arith.constant 0 : index
      %118 = vector.load %arg14[%117, %c0_71] : memref<301x32xf32, #tpu.memory_space<vmem>>, vector<1x32xf32>
      %c1 = arith.constant 1 : index
      %119 = memref.load %arg1[%c1] : memref<8xi32, #tpu.memory_space<smem>>
      %c0_i32_72 = arith.constant 0 : i32
      %c300_i32_73 = arith.constant 300 : i32
      %120 = arith.maxsi %c0_i32_72, %119 : i32
      %121 = arith.minsi %c300_i32_73, %120 : i32
      %122 = arith.index_cast %121 : i32 to index
      %c0_74 = arith.constant 0 : index
      %123 = vector.load %arg14[%122, %c0_74] : memref<301x32xf32, #tpu.memory_space<vmem>>, vector<1x32xf32>
      %c2 = arith.constant 2 : index
      %124 = memref.load %arg1[%c2] : memref<8xi32, #tpu.memory_space<smem>>
      %c0_i32_75 = arith.constant 0 : i32
      %c300_i32_76 = arith.constant 300 : i32
      %125 = arith.maxsi %c0_i32_75, %124 : i32
      %126 = arith.minsi %c300_i32_76, %125 : i32
      %127 = arith.index_cast %126 : i32 to index
      %c0_77 = arith.constant 0 : index
      %128 = vector.load %arg14[%127, %c0_77] : memref<301x32xf32, #tpu.memory_space<vmem>>, vector<1x32xf32>
      %c3 = arith.constant 3 : index
      %129 = memref.load %arg1[%c3] : memref<8xi32, #tpu.memory_space<smem>>
      %c0_i32_78 = arith.constant 0 : i32
      %c300_i32_79 = arith.constant 300 : i32
      %130 = arith.maxsi %c0_i32_78, %129 : i32
      %131 = arith.minsi %c300_i32_79, %130 : i32
      %132 = arith.index_cast %131 : i32 to index
      %c0_80 = arith.constant 0 : index
      %133 = vector.load %arg14[%132, %c0_80] : memref<301x32xf32, #tpu.memory_space<vmem>>, vector<1x32xf32>
      %c4 = arith.constant 4 : index
      %134 = memref.load %arg1[%c4] : memref<8xi32, #tpu.memory_space<smem>>
      %c0_i32_81 = arith.constant 0 : i32
      %c300_i32_82 = arith.constant 300 : i32
      %135 = arith.maxsi %c0_i32_81, %134 : i32
      %136 = arith.minsi %c300_i32_82, %135 : i32
      %137 = arith.index_cast %136 : i32 to index
      %c0_83 = arith.constant 0 : index
      %138 = vector.load %arg14[%137, %c0_83] : memref<301x32xf32, #tpu.memory_space<vmem>>, vector<1x32xf32>
      %c5 = arith.constant 5 : index
      %139 = memref.load %arg1[%c5] : memref<8xi32, #tpu.memory_space<smem>>
      %c0_i32_84 = arith.constant 0 : i32
      %c300_i32_85 = arith.constant 300 : i32
      %140 = arith.maxsi %c0_i32_84, %139 : i32
      %141 = arith.minsi %c300_i32_85, %140 : i32
      %142 = arith.index_cast %141 : i32 to index
      %c0_86 = arith.constant 0 : index
      %143 = vector.load %arg14[%142, %c0_86] : memref<301x32xf32, #tpu.memory_space<vmem>>, vector<1x32xf32>
      %c6 = arith.constant 6 : index
      %144 = memref.load %arg1[%c6] : memref<8xi32, #tpu.memory_space<smem>>
      %c0_i32_87 = arith.constant 0 : i32
      %c300_i32_88 = arith.constant 300 : i32
      %145 = arith.maxsi %c0_i32_87, %144 : i32
      %146 = arith.minsi %c300_i32_88, %145 : i32
      %147 = arith.index_cast %146 : i32 to index
      %c0_89 = arith.constant 0 : index
      %148 = vector.load %arg14[%147, %c0_89] : memref<301x32xf32, #tpu.memory_space<vmem>>, vector<1x32xf32>
      %c7 = arith.constant 7 : index
      %149 = memref.load %arg1[%c7] : memref<8xi32, #tpu.memory_space<smem>>
      %c0_i32_90 = arith.constant 0 : i32
      %c300_i32_91 = arith.constant 300 : i32
      %150 = arith.maxsi %c0_i32_90, %149 : i32
      %151 = arith.minsi %c300_i32_91, %150 : i32
      %152 = arith.index_cast %151 : i32 to index
      %c0_92 = arith.constant 0 : index
      %153 = vector.load %arg14[%152, %c0_92] : memref<301x32xf32, #tpu.memory_space<vmem>>, vector<1x32xf32>
      %154 = tpu.concatenate %118, %123, %128, %133, %138, %143, %148, %153 in 0 : vector<1x32xf32>, vector<1x32xf32>, vector<1x32xf32>, vector<1x32xf32>, vector<1x32xf32>, vector<1x32xf32>, vector<1x32xf32>, vector<1x32xf32> -> vector<8x32xf32>
      %c0_93 = arith.constant 0 : index
      %c0_94 = arith.constant 0 : index
      %155 = vector.load %arg5[%c0_93, %c0_94] : memref<8x32xf32, #tpu.memory_space<vmem>>, vector<8x32xf32>
      %156 = tpu.concatenate %154, %52, %155 in 1 : vector<8x32xf32>, vector<8x8xf32>, vector<8x32xf32> -> vector<8x72xf32>
      %c0_95 = arith.constant 0 : index
      %c0_96 = arith.constant 0 : index
      %157 = vector.load %arg6[%c0_95, %c0_96] : memref<8x32xf32, #tpu.memory_space<vmem>>, vector<8x32xf32>
      %158 = arith.truncf %156 : vector<8x72xf32> to vector<8x72xbf16>
      %c0_97 = arith.constant 0 : index
      %c0_98 = arith.constant 0 : index
      %159 = vector.load %arg15[%c0_97, %c0_98] : memref<72x128xbf16, #tpu.memory_space<vmem>>, vector<72x128xbf16>
      %cst_99 = arith.constant dense<0.000000e+00> : vector<8x128xf32>
      %160 = tpu.matmul %158, %159, %cst_99 {dimension_numbers = #tpu.dot_dimension_numbers<[1], [0], [0], [1], [0, 0, 1, 1], [], []>} : vector<8x72xbf16>, vector<72x128xbf16>, vector<8x128xf32> -> vector<8x128xf32>
      %c0_100 = arith.constant 0 : index
      %c0_101 = arith.constant 0 : index
      %161 = vector.load %arg16[%c0_100, %c0_101] : memref<1x128xf32, #tpu.memory_space<vmem>>, vector<1x128xf32>
      %162 = vector.broadcast %161 : vector<1x128xf32> to vector<8x128xf32>
      %163 = arith.addf %160, %162 : vector<8x128xf32>
      %164 = vector.extract_strided_slice %163 {offsets = [0, 0], sizes = [8, 32], strides = [1, 1]} : vector<8x128xf32> to vector<8x32xf32>
      %165 = arith.negf %164 : vector<8x32xf32>
      %166 = math.exp %165 : vector<8x32xf32>
      %cst_102 = arith.constant 1.000000e+00 : f32
      %167 = vector.broadcast %cst_102 : f32 to vector<8x32xf32>
      %168 = arith.addf %167, %166 : vector<8x32xf32>
      %169 = arith.divf %167, %168 : vector<8x32xf32>
      %170 = vector.extract_strided_slice %163 {offsets = [0, 32], sizes = [8, 32], strides = [1, 1]} : vector<8x128xf32> to vector<8x32xf32>
      %171 = arith.negf %170 : vector<8x32xf32>
      %172 = math.exp %171 : vector<8x32xf32>
      %cst_103 = arith.constant 1.000000e+00 : f32
      %173 = vector.broadcast %cst_103 : f32 to vector<8x32xf32>
      %174 = arith.addf %173, %172 : vector<8x32xf32>
      %175 = arith.divf %173, %174 : vector<8x32xf32>
      %176 = vector.extract_strided_slice %163 {offsets = [0, 64], sizes = [8, 32], strides = [1, 1]} : vector<8x128xf32> to vector<8x32xf32>
      %177 = math.tanh %176 : vector<8x32xf32>
      %178 = vector.extract_strided_slice %163 {offsets = [0, 96], sizes = [8, 32], strides = [1, 1]} : vector<8x128xf32> to vector<8x32xf32>
      %179 = arith.negf %178 : vector<8x32xf32>
      %180 = math.exp %179 : vector<8x32xf32>
      %cst_104 = arith.constant 1.000000e+00 : f32
      %181 = vector.broadcast %cst_104 : f32 to vector<8x32xf32>
      %182 = arith.addf %181, %180 : vector<8x32xf32>
      %183 = arith.divf %181, %182 : vector<8x32xf32>
      %184 = arith.mulf %175, %157 : vector<8x32xf32>
      %185 = arith.mulf %169, %177 : vector<8x32xf32>
      %186 = arith.addf %184, %185 : vector<8x32xf32>
      %187 = math.tanh %186 : vector<8x32xf32>
      %188 = arith.mulf %183, %187 : vector<8x32xf32>
      %c0_105 = arith.constant 0 : index
      %c0_106 = arith.constant 0 : index
      %189 = vector.load %arg23[%c0_105, %c0_106] : memref<8x32xf32, #tpu.memory_space<vmem>>, vector<8x32xf32>
      tpu.vector_store %arg23[%c0_105, %c0_106], %188 {strides = array<i32>} : memref<8x32xf32, #tpu.memory_space<vmem>>, vector<8x32xf32>,
      %c0_107 = arith.constant 0 : index
      %c0_108 = arith.constant 0 : index
      %190 = vector.load %arg24[%c0_107, %c0_108] : memref<8x32xf32, #tpu.memory_space<vmem>>, vector<8x32xf32>
      tpu.vector_store %arg24[%c0_107, %c0_108], %186 {strides = array<i32>} : memref<8x32xf32, #tpu.memory_space<vmem>>, vector<8x32xf32>,
      %c0_109 = arith.constant 0 : index
      %c0_110 = arith.constant 0 : index
      %191 = vector.load %arg8[%c0_109, %c0_110] : memref<8x32xf32, #tpu.memory_space<vmem>>, vector<8x32xf32>
      %c0_111 = arith.constant 0 : index
      %c0_112 = arith.constant 0 : index
      %192 = vector.load %arg17[%c0_111, %c0_112] : memref<32x16xf32, #tpu.memory_space<vmem>>, vector<32x16xf32>
      %cst_113 = arith.constant dense<0.000000e+00> : vector<8x16xf32>
      %193 = tpu.matmul %191, %192, %cst_113 {dimension_numbers = #tpu.dot_dimension_numbers<[1], [0], [0], [1], [0, 0, 1, 1], [], []>} : vector<8x32xf32>, vector<32x16xf32>, vector<8x16xf32> -> vector<8x16xf32>
      %194 = arith.mulf %193, %193 : vector<8x16xf32>
      %cst_114 = arith.constant dense<0.000000e+00> : vector<8xf32>
      %195 = vector.multi_reduction <add>, %194, %cst_114 [1] : vector<8x16xf32> to vector<8xf32>
      %196 = vector.shape_cast %195 : vector<8xf32> to vector<8x1xf32>
      %cst_115 = arith.constant 1.000000e-30 : f32
      %197 = vector.broadcast %cst_115 : f32 to vector<8x1xf32>
      %198 = arith.maximumf %196, %197 : vector<8x1xf32>
      %199 = math.rsqrt %198 : vector<8x1xf32>
      %cst_116 = arith.constant 1.000000e+00 : f32
      %200 = vector.broadcast %cst_116 : f32 to vector<8x1xf32>
      %201 = arith.cmpf ogt, %196, %200 : vector<8x1xf32>
      %cst_117 = arith.constant 1.000000e+00 : f32
      %202 = vector.broadcast %cst_117 : f32 to vector<8x1xf32>
      %203 = arith.mulf %202, %199 : vector<8x1xf32>
      %cst_118 = arith.constant 1.000000e+00 : f32
      %204 = vector.broadcast %cst_118 : f32 to vector<8x1xf32>
      %205 = arith.select %201, %203, %204 : vector<8x1xi1>, vector<8x1xf32>
      %206 = vector.broadcast %205 : vector<8x1xf32> to vector<8x16xf32>
      %207 = arith.mulf %193, %206 : vector<8x16xf32>
      %208 = vector.extract_strided_slice %207 {offsets = [0, 0], sizes = [8, 1], strides = [1, 1]} : vector<8x16xf32> to vector<8x1xf32>
      %209 = vector.broadcast %208 : vector<8x1xf32> to vector<8x32xf32>
      %210 = arith.mulf %188, %209 : vector<8x32xf32>
      %211 = vector.extract_strided_slice %207 {offsets = [0, 1], sizes = [8, 1], strides = [1, 1]} : vector<8x16xf32> to vector<8x1xf32>
      %212 = vector.broadcast %211 : vector<8x1xf32> to vector<8x32xf32>
      %213 = arith.mulf %188, %212 : vector<8x32xf32>
      %214 = vector.extract_strided_slice %207 {offsets = [0, 2], sizes = [8, 1], strides = [1, 1]} : vector<8x16xf32> to vector<8x1xf32>
      %215 = vector.broadcast %214 : vector<8x1xf32> to vector<8x32xf32>
      %216 = arith.mulf %188, %215 : vector<8x32xf32>
      %217 = vector.extract_strided_slice %207 {offsets = [0, 3], sizes = [8, 1], strides = [1, 1]} : vector<8x16xf32> to vector<8x1xf32>
      %218 = vector.broadcast %217 : vector<8x1xf32> to vector<8x32xf32>
      %219 = arith.mulf %188, %218 : vector<8x32xf32>
      %220 = vector.extract_strided_slice %207 {offsets = [0, 4], sizes = [8, 1], strides = [1, 1]} : vector<8x16xf32> to vector<8x1xf32>
      %221 = vector.broadcast %220 : vector<8x1xf32> to vector<8x32xf32>
      %222 = arith.mulf %188, %221 : vector<8x32xf32>
      %223 = vector.extract_strided_slice %207 {offsets = [0, 5], sizes = [8, 1], strides = [1, 1]} : vector<8x16xf32> to vector<8x1xf32>
      %224 = vector.broadcast %223 : vector<8x1xf32> to vector<8x32xf32>
      %225 = arith.mulf %188, %224 : vector<8x32xf32>
      %226 = vector.extract_strided_slice %207 {offsets = [0, 6], sizes = [8, 1], strides = [1, 1]} : vector<8x16xf32> to vector<8x1xf32>
      %227 = vector.broadcast %226 : vector<8x1xf32> to vector<8x32xf32>
      %228 = arith.mulf %188, %227 : vector<8x32xf32>
      %229 = vector.extract_strided_slice %207 {offsets = [0, 7], sizes = [8, 1], strides = [1, 1]} : vector<8x16xf32> to vector<8x1xf32>
      %230 = vector.broadcast %229 : vector<8x1xf32> to vector<8x32xf32>
      %231 = arith.mulf %188, %230 : vector<8x32xf32>
      %232 = vector.extract_strided_slice %207 {offsets = [0, 8], sizes = [8, 1], strides = [1, 1]} : vector<8x16xf32> to vector<8x1xf32>
      %233 = vector.broadcast %232 : vector<8x1xf32> to vector<8x32xf32>
      %234 = arith.mulf %188, %233 : vector<8x32xf32>
      %235 = vector.extract_strided_slice %207 {offsets = [0, 9], sizes = [8, 1], strides = [1, 1]} : vector<8x16xf32> to vector<8x1xf32>
      %236 = vector.broadcast %235 : vector<8x1xf32> to vector<8x32xf32>
      %237 = arith.mulf %188, %236 : vector<8x32xf32>
      %238 = vector.extract_strided_slice %207 {offsets = [0, 10], sizes = [8, 1], strides = [1, 1]} : vector<8x16xf32> to vector<8x1xf32>
      %239 = vector.broadcast %238 : vector<8x1xf32> to vector<8x32xf32>
      %240 = arith.mulf %188, %239 : vector<8x32xf32>
      %241 = vector.extract_strided_slice %207 {offsets = [0, 11], sizes = [8, 1], strides = [1, 1]} : vector<8x16xf32> to vector<8x1xf32>
      %242 = vector.broadcast %241 : vector<8x1xf32> to vector<8x32xf32>
      %243 = arith.mulf %188, %242 : vector<8x32xf32>
      %244 = vector.extract_strided_slice %207 {offsets = [0, 12], sizes = [8, 1], strides = [1, 1]} : vector<8x16xf32> to vector<8x1xf32>
      %245 = vector.broadcast %244 : vector<8x1xf32> to vector<8x32xf32>
      %246 = arith.mulf %188, %245 : vector<8x32xf32>
      %247 = vector.extract_strided_slice %207 {offsets = [0, 13], sizes = [8, 1], strides = [1, 1]} : vector<8x16xf32> to vector<8x1xf32>
      %248 = vector.broadcast %247 : vector<8x1xf32> to vector<8x32xf32>
      %249 = arith.mulf %188, %248 : vector<8x32xf32>
      %250 = vector.extract_strided_slice %207 {offsets = [0, 14], sizes = [8, 1], strides = [1, 1]} : vector<8x16xf32> to vector<8x1xf32>
      %251 = vector.broadcast %250 : vector<8x1xf32> to vector<8x32xf32>
      %252 = arith.mulf %188, %251 : vector<8x32xf32>
      %253 = vector.extract_strided_slice %207 {offsets = [0, 15], sizes = [8, 1], strides = [1, 1]} : vector<8x16xf32> to vector<8x1xf32>
      %254 = vector.broadcast %253 : vector<8x1xf32> to vector<8x32xf32>
      %255 = arith.mulf %188, %254 : vector<8x32xf32>
      %256 = tpu.concatenate %210, %213, %216, %219, %222, %225, %228, %231, %234, %237, %240, %243, %246, %249, %252, %255 in 1 : vector<8x32xf32>, vector<8x32xf32>, vector<8x32xf32>, vector<8x32xf32>, vector<8x32xf32>, vector<8x32xf32>, vector<8x32xf32>, vector<8x32xf32>, vector<8x32xf32>, vector<8x32xf32>, vector<8x32xf32>, vector<8x32xf32>, vector<8x32xf32>, vector<8x32xf32>, vector<8x32xf32>, vector<8x32xf32> -> vector<8x512xf32>
      %257 = tpu.concatenate %256, %207 in 1 : vector<8x512xf32>, vector<8x16xf32> -> vector<8x528xf32>
      %c0_119 = arith.constant 0 : index
      %c0_120 = arith.constant 0 : index
      %258 = vector.load %arg30[%c0_119, %c0_120] : memref<8x528xf32, #tpu.memory_space<vmem>>, vector<8x528xf32>
      tpu.vector_store %arg30[%c0_119, %c0_120], %257 {strides = array<i32>} : memref<8x528xf32, #tpu.memory_space<vmem>>, vector<8x528xf32>,
      %cst_121 = arith.constant 0xFF800000 : f32
      %259 = vector.broadcast %cst_121 : f32 to vector<8x1xf32>
      %c0_122 = arith.constant 0 : index
      %c0_123 = arith.constant 0 : index
      %260 = vector.load %arg28[%c0_122, %c0_123] : memref<8x1xf32, #tpu.memory_space<vmem>>, vector<8x1xf32>
      tpu.vector_store %arg28[%c0_122, %c0_123], %259 {strides = array<i32>} : memref<8x1xf32, #tpu.memory_space<vmem>>, vector<8x1xf32>,
      %cst_124 = arith.constant 0.000000e+00 : f32
      %261 = vector.broadcast %cst_124 : f32 to vector<8x1xf32>
      %c0_125 = arith.constant 0 : index
      %c0_126 = arith.constant 0 : index
      %262 = vector.load %arg29[%c0_125, %c0_126] : memref<8x1xf32, #tpu.memory_space<vmem>>, vector<8x1xf32>
      tpu.vector_store %arg29[%c0_125, %c0_126], %261 {strides = array<i32>} : memref<8x1xf32, #tpu.memory_space<vmem>>, vector<8x1xf32>,
      %cst_127 = arith.constant 0xFF800000 : f32
      %263 = vector.broadcast %cst_127 : f32 to vector<8x1xf32>
      %c0_128 = arith.constant 0 : index
      %c0_129 = arith.constant 0 : index
      %264 = vector.load %arg31[%c0_128, %c0_129] : memref<8x1xf32, #tpu.memory_space<vmem>>, vector<8x1xf32>
      tpu.vector_store %arg31[%c0_128, %c0_129], %263 {strides = array<i32>} : memref<8x1xf32, #tpu.memory_space<vmem>>, vector<8x1xf32>,
      %c0_i32_130 = arith.constant 0 : i32
      %265 = vector.broadcast %c0_i32_130 : i32 to vector<8x1xi32>
      %c0_131 = arith.constant 0 : index
      %c0_132 = arith.constant 0 : index
      %266 = vector.load %arg20[%c0_131, %c0_132] : memref<8x1xi32, #tpu.memory_space<vmem>>, vector<8x1xi32>
      tpu.vector_store %arg20[%c0_131, %c0_132], %265 {strides = array<i32>} : memref<8x1xi32, #tpu.memory_space<vmem>>, vector<8x1xi32>,
    } else {
    }
    %c0 = arith.constant 0 : index
    %c0_1 = arith.constant 0 : index
    %3 = vector.load %arg30[%c0, %c0_1] : memref<8x528xf32, #tpu.memory_space<vmem>>, vector<8x528xf32>
    %4 = arith.truncf %3 : vector<8x528xf32> to vector<8x528xbf16>
    %c0_2 = arith.constant 0 : index
    %c0_3 = arith.constant 0 : index
    %5 = vector.load %arg18[%c0_2, %c0_3] : memref<528x128xbf16, #tpu.memory_space<vmem>>, vector<528x128xbf16>
    %cst = arith.constant dense<0.000000e+00> : vector<8x128xf32>
    %6 = tpu.matmul %4, %5, %cst {dimension_numbers = #tpu.dot_dimension_numbers<[1], [0], [0], [1], [0, 0, 1, 1], [], []>} : vector<8x528xbf16>, vector<528x128xbf16>, vector<8x128xf32> -> vector<8x128xf32>
    %cst_4 = arith.constant 1.000000e+00 : f32
    %7 = vector.broadcast %cst_4 : f32 to vector<8x128xf32>
    %8 = arith.mulf %7, %6 : vector<8x128xf32>
    %c128_i32 = arith.constant 128 : i32
    %9 = arith.muli %arg0, %c128_i32 : i32
    %10 = tpu.iota {dimensions = array<i32: 1>} : vector<8x128xi32>
    %11 = vector.broadcast %9 : i32 to vector<8x128xi32>
    %12 = arith.addi %11, %10 : vector<8x128xi32>
    %c300_i32 = arith.constant 300 : i32
    %13 = vector.broadcast %c300_i32 : i32 to vector<8x128xi32>
    %14 = arith.cmpi slt, %12, %13 : vector<8x128xi32>
    %cst_5 = arith.constant 0xFF800000 : f32
    %15 = vector.broadcast %cst_5 : f32 to vector<8x128xf32>
    %16 = arith.select %14, %8, %15 : vector<8x128xi1>, vector<8x128xf32>
    %c0_6 = arith.constant 0 : index
    %c0_7 = arith.constant 0 : index
    %17 = vector.load %arg27[%c0_6, %c0_7] : memref<8x128xf32, #tpu.memory_space<vmem>>, vector<8x128xf32>
    tpu.vector_store %arg27[%c0_6, %c0_7], %16 {strides = array<i32>} : memref<8x128xf32, #tpu.memory_space<vmem>>, vector<8x128xf32>,
    %c0_8 = arith.constant 0 : index
    %c0_9 = arith.constant 0 : index
    %18 = vector.load %arg28[%c0_8, %c0_9] : memref<8x1xf32, #tpu.memory_space<vmem>>, vector<8x1xf32>
    %cst_10 = arith.constant dense<0xFF800000> : vector<8xf32>
    %19 = vector.multi_reduction <maximumf>, %16, %cst_10 [1] : vector<8x128xf32> to vector<8xf32>
    %20 = vector.shape_cast %19 : vector<8xf32> to vector<8x1xf32>
    %21 = arith.maximumf %18, %20 : vector<8x1xf32>
    %22 = vector.broadcast %21 : vector<8x1xf32> to vector<8x128xf32>
    %23 = arith.subf %16, %22 : vector<8x128xf32>
    %24 = math.exp %23 : vector<8x128xf32>
    %25 = arith.subf %18, %21 : vector<8x1xf32>
    %26 = math.exp %25 : vector<8x1xf32>
    %c0_11 = arith.constant 0 : index
    %c0_12 = arith.constant 0 : index
    %27 = vector.load %arg29[%c0_11, %c0_12] : memref<8x1xf32, #tpu.memory_space<vmem>>, vector<8x1xf32>
    %28 = arith.mulf %26, %27 : vector<8x1xf32>
    %cst_13 = arith.constant dense<0.000000e+00> : vector<8xf32>
    %29 = vector.multi_reduction <add>, %24, %cst_13 [1] : vector<8x128xf32> to vector<8xf32>
    %30 = vector.shape_cast %29 : vector<8xf32> to vector<8x1xf32>
    %31 = arith.addf %28, %30 : vector<8x1xf32>
    %c0_14 = arith.constant 0 : index
    %c0_15 = arith.constant 0 : index
    %32 = vector.load %arg29[%c0_14, %c0_15] : memref<8x1xf32, #tpu.memory_space<vmem>>, vector<8x1xf32>
    tpu.vector_store %arg29[%c0_14, %c0_15], %31 {strides = array<i32>} : memref<8x1xf32, #tpu.memory_space<vmem>>, vector<8x1xf32>,
    %c0_16 = arith.constant 0 : index
    %c0_17 = arith.constant 0 : index
    %33 = vector.load %arg28[%c0_16, %c0_17] : memref<8x1xf32, #tpu.memory_space<vmem>>, vector<8x1xf32>
    tpu.vector_store %arg28[%c0_16, %c0_17], %21 {strides = array<i32>} : memref<8x1xf32, #tpu.memory_space<vmem>>, vector<8x1xf32>,
    %c0_18 = arith.constant 0 : index
    %c0_19 = arith.constant 0 : index
    %34 = vector.load %arg19[%c0_18, %c0_19] : memref<8x128xf32, #tpu.memory_space<vmem>>, vector<8x128xf32>
    %35 = arith.addf %16, %34 : vector<8x128xf32>
    %cst_20 = arith.constant dense<0xFF800000> : vector<8xf32>
    %36 = vector.multi_reduction <maximumf>, %35, %cst_20 [1] : vector<8x128xf32> to vector<8xf32>
    %37 = vector.shape_cast %36 : vector<8xf32> to vector<8x1xf32>
    %38 = vector.broadcast %37 : vector<8x1xf32> to vector<8x128xf32>
    %39 = arith.cmpf oge, %35, %38 : vector<8x128xf32>
    %c1073741824_i32 = arith.constant 1073741824 : i32
    %40 = vector.broadcast %c1073741824_i32 : i32 to vector<8x128xi32>
    %41 = arith.select %39, %12, %40 : vector<8x128xi1>, vector<8x128xi32>
    %cst_21 = arith.constant dense<2147483647> : vector<8xi32>
    %42 = vector.multi_reduction <minsi>, %41, %cst_21 [1] : vector<8x128xi32> to vector<8xi32>
    %43 = vector.shape_cast %42 : vector<8xi32> to vector<8x1xi32>
    %c0_22 = arith.constant 0 : index
    %c0_23 = arith.constant 0 : index
    %44 = vector.load %arg31[%c0_22, %c0_23] : memref<8x1xf32, #tpu.memory_space<vmem>>, vector<8x1xf32>
    %45 = arith.cmpf ogt, %37, %44 : vector<8x1xf32>
    %c0_24 = arith.constant 0 : index
    %c0_25 = arith.constant 0 : index
    %46 = vector.load %arg20[%c0_24, %c0_25] : memref<8x1xi32, #tpu.memory_space<vmem>>, vector<8x1xi32>
    %47 = arith.select %45, %43, %46 : vector<8x1xi1>, vector<8x1xi32>
    %c0_26 = arith.constant 0 : index
    %c0_27 = arith.constant 0 : index
    %48 = vector.load %arg20[%c0_26, %c0_27] : memref<8x1xi32, #tpu.memory_space<vmem>>, vector<8x1xi32>
    tpu.vector_store %arg20[%c0_26, %c0_27], %47 {strides = array<i32>} : memref<8x1xi32, #tpu.memory_space<vmem>>, vector<8x1xi32>,
    %c0_28 = arith.constant 0 : index
    %c0_29 = arith.constant 0 : index
    %49 = vector.load %arg31[%c0_28, %c0_29] : memref<8x1xf32, #tpu.memory_space<vmem>>, vector<8x1xf32>
    %50 = arith.maximumf %49, %37 : vector<8x1xf32>
    %c0_30 = arith.constant 0 : index
    %c0_31 = arith.constant 0 : index
    %51 = vector.load %arg31[%c0_30, %c0_31] : memref<8x1xf32, #tpu.memory_space<vmem>>, vector<8x1xf32>
    tpu.vector_store %arg31[%c0_30, %c0_31], %50 {strides = array<i32>} : memref<8x1xf32, #tpu.memory_space<vmem>>, vector<8x1xf32>,
    return
  }
  func.func @transform_0(%arg0: i32, %arg1: memref<8xi32, #tpu.memory_space<smem>>) -> (i32, i32) {
    %c0_i32 = arith.constant 0 : i32
    %c0_i32_0 = arith.constant 0 : i32
    %c0_i32_1 = arith.constant 0 : i32
    return %c0_i32, %c0_i32_0 : i32, i32
  }
  func.func @transform_1(%arg0: i32, %arg1: memref<8xi32, #tpu.memory_space<smem>>) -> (i32, i32) {
    %c0_i32 = arith.constant 0 : i32
    %c0_i32_0 = arith.constant 0 : i32
    %c0_i32_1 = arith.constant 0 : i32
    return %c0_i32, %c0_i32_0 : i32, i32
  }
  func.func @transform_2(%arg0: i32, %arg1: memref<8xi32, #tpu.memory_space<smem>>) -> (i32, i32) {
    %c0_i32 = arith.constant 0 : i32
    %c0_i32_0 = arith.constant 0 : i32
    %c0_i32_1 = arith.constant 0 : i32
    return %c0_i32, %c0_i32_0 : i32, i32
  }
  func.func @transform_3(%arg0: i32, %arg1: memref<8xi32, #tpu.memory_space<smem>>) -> (i32, i32) {
    %c0_i32 = arith.constant 0 : i32
    %c0_i32_0 = arith.constant 0 : i32
    %c0_i32_1 = arith.constant 0 : i32
    return %c0_i32, %c0_i32_0 : i32, i32
  }
  func.func @transform_4(%arg0: i32, %arg1: memref<8xi32, #tpu.memory_space<smem>>) -> (i32, i32) {
    %c0_i32 = arith.constant 0 : i32
    %c0_i32_0 = arith.constant 0 : i32
    %c0_i32_1 = arith.constant 0 : i32
    return %c0_i32, %c0_i32_0 : i32, i32
  }
  func.func @transform_5(%arg0: i32, %arg1: memref<8xi32, #tpu.memory_space<smem>>) -> (i32, i32) {
    %c0_i32 = arith.constant 0 : i32
    %c0_i32_0 = arith.constant 0 : i32
    %c0_i32_1 = arith.constant 0 : i32
    return %c0_i32, %c0_i32_0 : i32, i32
  }
  func.func @transform_6(%arg0: i32, %arg1: memref<8xi32, #tpu.memory_space<smem>>) -> (i32, i32) {
    %c0_i32 = arith.constant 0 : i32
    %c0_i32_0 = arith.constant 0 : i32
    %c0_i32_1 = arith.constant 0 : i32
    return %c0_i32, %c0_i32_0 : i32, i32
  }
  func.func @transform_7(%arg0: i32, %arg1: memref<8xi32, #tpu.memory_space<smem>>) -> (i32, i32) {
    %c0_i32 = arith.constant 0 : i32
    %c0_i32_0 = arith.constant 0 : i32
    %c0_i32_1 = arith.constant 0 : i32
    return %c0_i32, %c0_i32_0 : i32, i32
  }
  func.func @transform_8(%arg0: i32, %arg1: memref<8xi32, #tpu.memory_space<smem>>) -> (i32, i32) {
    %c0_i32 = arith.constant 0 : i32
    %c0_i32_0 = arith.constant 0 : i32
    %c0_i32_1 = arith.constant 0 : i32
    return %c0_i32, %c0_i32_0 : i32, i32
  }
  func.func @transform_9(%arg0: i32, %arg1: memref<8xi32, #tpu.memory_space<smem>>) -> (i32, i32) {
    %c0_i32 = arith.constant 0 : i32
    %c0_i32_0 = arith.constant 0 : i32
    %c0_i32_1 = arith.constant 0 : i32
    return %c0_i32, %c0_i32_0 : i32, i32
  }
  func.func @transform_10(%arg0: i32, %arg1: memref<8xi32, #tpu.memory_space<smem>>) -> (i32, i32) {
    %c0_i32 = arith.constant 0 : i32
    %c0_i32_0 = arith.constant 0 : i32
    %c0_i32_1 = arith.constant 0 : i32
    return %c0_i32, %c0_i32_0 : i32, i32
  }
  func.func @transform_11(%arg0: i32, %arg1: memref<8xi32, #tpu.memory_space<smem>>) -> (i32, i32) {
    %c0_i32 = arith.constant 0 : i32
    %c0_i32_0 = arith.constant 0 : i32
    %c0_i32_1 = arith.constant 0 : i32
    return %c0_i32, %c0_i32_0 : i32, i32
  }
  func.func @transform_12(%arg0: i32, %arg1: memref<8xi32, #tpu.memory_space<smem>>) -> (i32, i32) {
    %c0_i32 = arith.constant 0 : i32
    %c0_i32_0 = arith.constant 0 : i32
    %c0_i32_1 = arith.constant 0 : i32
    return %c0_i32, %c0_i32_0 : i32, i32
  }
  func.func @transform_13(%arg0: i32, %arg1: memref<8xi32, #tpu.memory_space<smem>>) -> (i32, i32) {
    %c0_i32 = arith.constant 0 : i32
    %c0_i32_0 = arith.constant 0 : i32
    %c0_i32_1 = arith.constant 0 : i32
    return %c0_i32, %c0_i32_0 : i32, i32
  }
  func.func @transform_14(%arg0: i32, %arg1: memref<8xi32, #tpu.memory_space<smem>>) -> (i32, i32) {
    %c0_i32 = arith.constant 0 : i32
    %c0_i32_0 = arith.constant 0 : i32
    %c0_i32_1 = arith.constant 0 : i32
    return %c0_i32, %c0_i32_0 : i32, i32
  }
  func.func @transform_15(%arg0: i32, %arg1: memref<8xi32, #tpu.memory_space<smem>>) -> (i32, i32) {
    %c0_i32 = arith.constant 0 : i32
    %c0_i32_0 = arith.constant 0 : i32
    %c0_i32_1 = arith.constant 0 : i32
    return %c0_i32, %c0_i32_0 : i32, i32
  }
  func.func @transform_16(%arg0: i32, %arg1: memref<8xi32, #tpu.memory_space<smem>>) -> (i32, i32) {
    %c0_i32 = arith.constant 0 : i32
    %c0_i32_0 = arith.constant 0 : i32
    return %c0_i32, %arg0 : i32, i32
  }
  func.func @transform_17(%arg0: i32, %arg1: memref<8xi32, #tpu.memory_space<smem>>) -> (i32, i32) {
    %c0_i32 = arith.constant 0 : i32
    %c0_i32_0 = arith.constant 0 : i32
    return %c0_i32, %arg0 : i32, i32
  }
  func.func @transform_18(%arg0: i32, %arg1: memref<8xi32, #tpu.memory_space<smem>>) -> (i32, i32) {
    %c0_i32 = arith.constant 0 : i32
    %c0_i32_0 = arith.constant 0 : i32
    %c0_i32_1 = arith.constant 0 : i32
    return %c0_i32, %c0_i32_0 : i32, i32
  }
  func.func @transform_19(%arg0: i32, %arg1: memref<8xi32, #tpu.memory_space<smem>>) -> (i32, i32) {
    %c0_i32 = arith.constant 0 : i32
    %c0_i32_0 = arith.constant 0 : i32
    %c0_i32_1 = arith.constant 0 : i32
    return %c0_i32, %c0_i32_0 : i32, i32
  }
  func.func @transform_20(%arg0: i32, %arg1: memref<8xi32, #tpu.memory_space<smem>>) -> (i32, i32) {
    %c0_i32 = arith.constant 0 : i32
    %c0_i32_0 = arith.constant 0 : i32
    %c0_i32_1 = arith.constant 0 : i32
    return %c0_i32, %c0_i32_0 : i32, i32
  }
  func.func @transform_21(%arg0: i32, %arg1: memref<8xi32, #tpu.memory_space<smem>>) -> (i32, i32) {
    %c0_i32 = arith.constant 0 : i32
    %c0_i32_0 = arith.constant 0 : i32
    %c0_i32_1 = arith.constant 0 : i32
    return %c0_i32, %c0_i32_0 : i32, i32
  }
  func.func @transform_22(%arg0: i32, %arg1: memref<8xi32, #tpu.memory_space<smem>>) -> (i32, i32) {
    %c0_i32 = arith.constant 0 : i32
    %c0_i32_0 = arith.constant 0 : i32
    %c0_i32_1 = arith.constant 0 : i32
    return %c0_i32, %c0_i32_0 : i32, i32
  }
  func.func @transform_23(%arg0: i32, %arg1: memref<8xi32, #tpu.memory_space<smem>>) -> (i32, i32) {
    %c0_i32 = arith.constant 0 : i32
    %c0_i32_0 = arith.constant 0 : i32
    %c0_i32_1 = arith.constant 0 : i32
    return %c0_i32, %c0_i32_0 : i32, i32
  }
  func.func @transform_24(%arg0: i32, %arg1: memref<8xi32, #tpu.memory_space<smem>>) -> (i32, i32) {
    %c0_i32 = arith.constant 0 : i32
    %c0_i32_0 = arith.constant 0 : i32
    %c0_i32_1 = arith.constant 0 : i32
    return %c0_i32, %c0_i32_0 : i32, i32
  }
  func.func @transform_25(%arg0: i32, %arg1: memref<8xi32, #tpu.memory_space<smem>>) -> (i32, i32) {
    %c0_i32 = arith.constant 0 : i32
    %c0_i32_0 = arith.constant 0 : i32
    return %c0_i32, %arg0 : i32, i32
  }
  func.func @transform_26(%arg0: i32, %arg1: memref<8xi32, #tpu.memory_space<smem>>) -> (i32, i32) {
    %c0_i32 = arith.constant 0 : i32
    %c0_i32_0 = arith.constant 0 : i32
    %c0_i32_1 = arith.constant 0 : i32
    return %c0_i32, %c0_i32_0 : i32, i32
  }
  func.func @transform_27(%arg0: i32, %arg1: memref<8xi32, #tpu.memory_space<smem>>) -> (i32, i32) {
    %c0_i32 = arith.constant 0 : i32
    %c0_i32_0 = arith.constant 0 : i32
    %c0_i32_1 = arith.constant 0 : i32
    return %c0_i32, %c0_i32_0 : i32, i32
  }
}

</mosaic_0001>

<bundles_post_ra>
// kernel: tpu_custom_call.1
= control target key start
LH: loop header
LB: loop body
LE: loop exit
PB: predicated region body
PF: predicated region fallthrough
CT: control target
= control target key end

     0   :  { %s3722_s0 = inlined_call_operand.vmem [shape: s32[8], index: 0, kind: input, shape index: {}]   ;;  %s3723_s1 = inlined_call_operand.vmem [shape: f32[8,32], index: 1, kind: input, shape index: {}]   ;;  %s3724_s2 = inlined_call_operand.vmem [shape: f32[8,32], index: 2, kind: input, shape index: {}]   ;;  %s3725_s3 = inlined_call_operand.vmem [shape: f32[8,32], index: 3, kind: input, shape index: {}]   ;;  %s3726_s4 = inlined_call_operand.vmem [shape: f32[8,32], index: 4, kind: input, shape index: {}]   ;;  %s3727_s5 = inlined_call_operand.vmem [shape: f32[8,32], index: 5, kind: input, shape index: {}]   ;;  %s3728_s6 = inlined_call_operand.vmem [shape: f32[8,32], index: 6, kind: input, shape index: {}]   ;;  %s3729_s7 = inlined_call_operand.vmem [shape: f32[8,32], index: 7, kind: input, shape index: {}]   ;;  %s3730_s8 = inlined_call_operand.vmem [shape: f32[8,8], index: 8, kind: input, shape index: {}]   ;;  %s3731_s9 = inlined_call_operand.vmem [shape: bf16[72,128], index: 9, kind: input, shape index: {}]   ;;  %s3732_s10 = inlined_call_operand.vmem [shape: f32[1,128], index: 10, kind: input, shape index: {}]   ;;  %s3733_s11 = inlined_call_operand.vmem [shape: bf16[32,32], index: 11, kind: input, shape index: {}]   ;;  %s3734_s12 = inlined_call_operand.vmem [shape: f32[1,32], index: 12, kind: input, shape index: {}]   ;;  %s3735_s13 = inlined_call_operand.vmem [shape: f32[301,32], index: 13, kind: input, shape index: {}]   ;;  %s3736_s14 = inlined_call_operand.vmem [shape: bf16[72,128], index: 14, kind: input, shape index: {}]   ;;  %s3737_s15 = inlined_call_operand.vmem [shape: f32[1,128], index: 15, kind: input, shape index: {}]   ;;  %s3738_s16 = inlined_call_operand.vmem [shape: f32[32,16], index: 16, kind: input, shape index: {}]   ;;  %s3739_s17 = inlined_call_operand.hbm [shape: bf16[528,384], index: 17, kind: input, shape index: {}]   ;;  %s3740_s18 = inlined_call_operand.vmem [shape: f32[8,384], index: 18, kind: input, shape index: {}]   ;;  %s3741_s19 = inlined_call_operand.vmem [shape: s32[8,1], index: 19, kind: output, shape index: {0}]   ;;  %s3742_s20 = inlined_call_operand.hbm [shape: f32[8,32], index: 20, kind: output, shape index: {1}]   ;;  %s3743_s21 = inlined_call_operand.hbm [shape: f32[8,32], index: 21, kind: output, shape index: {2}]   ;;  %s3744_s22 = inlined_call_operand.hbm [shape: f32[8,32], index: 22, kind: output, shape index: {3}]   ;;  %s3745_s23 = inlined_call_operand.hbm [shape: f32[8,32], index: 23, kind: output, shape index: {4}]   ;;  %s3746_s24 = inlined_call_operand.hbm [shape: f32[8,32], index: 24, kind: output, shape index: {5}]   ;;  %s3747_s25 = inlined_call_operand.hbm [shape: f32[8,32], index: 25, kind: output, shape index: {6}]   ;;  %s3748_s26 = inlined_call_operand.hbm [shape: f32[8,384], index: 26, kind: output, shape index: {7}]   ;;  %s3749_s27 = inlined_call_operand.vmem [shape: f32[8,1], index: 27, kind: output, shape index: {8}]   ;;  %s3750_s28 = inlined_call_operand.vmem [shape: f32[8,1], index: 28, kind: output, shape index: {9}]  }
   0x1   :  { %3775 = sst [smem:[#allocation34_spill]] %s3722_s0 }
   0x2   :  { %3776 = sst [smem:[#allocation35_spill]] %s3723_s1 }
   0x3   :  { %3777 = sst [smem:[#allocation36_spill]] %s3724_s2 }
   0x4   :  { %3778 = sst [smem:[#allocation37_spill]] %s3725_s3 }
   0x5   :  { %3779 = sst [smem:[#allocation38_spill]] %s3726_s4 }
   0x6   :  { %3780 = sst [smem:[#allocation39_spill]] %s3727_s5 }
   0x7   :  { %3781 = sst [smem:[#allocation40_spill]] %s3728_s6 }
   0x8   :  { %3782 = sst [smem:[#allocation41_spill]] %s3729_s7 }
   0x9   :  { %3783 = sst [smem:[#allocation42_spill]] %s3730_s8 }
   0xa   :  { %3784 = sst [smem:[#allocation43_spill]] %s3731_s9 }
   0xb   :  { %3785 = sst [smem:[#allocation44_spill]] %s3732_s10 }
   0xc   :  { %3786 = sst [smem:[#allocation45_spill]] %s3733_s11 }
   0xd   :  { %3787 = sst [smem:[#allocation46_spill]] %s3734_s12 }
   0xe   :  { %3788 = sst [smem:[#allocation47_spill]] %s3738_s16 }
   0xf   :  { %3789 = sst [smem:[#allocation48_spill]] %s3739_s17 }
  0x10   :  { %3790 = sst [smem:[#allocation49_spill]] %s3740_s18 }
  0x11   :  { %3791 = sst [smem:[#allocation50_spill]] %s3742_s20 }
  0x12   :  { %3792 = sst [smem:[#allocation51_spill]] %s3743_s21 }
  0x13   :  { %3793 = sst [smem:[#allocation52_spill]] %s3744_s22 }
  0x14   :  { %3794 = sst [smem:[#allocation53_spill]] %s3745_s23 }
  0x15   :  { %3795 = sst [smem:[#allocation54_spill]] %s3746_s24 }
  0x16   :  { %3796 = sst [smem:[#allocation55_spill]] %s3747_s25 }
  0x17   :  { %3797 = sst [smem:[#allocation56_spill]] %s3748_s26 }
  0x18   :  { %s3798_s9 = sld [smem:[#allocation34_spill]] }
  0x1e   :  { %s34_s22 = sshll.u32 %s3798_s9, 4  ;;  %s35_s22 = int_to_ptr.vmem [resolvable:$true] %s34_s22 }
  0x1f   :  { %s2714_s30 = scalar_lea.vmem %s35_s22, 16  ;;  %p2719_p1 = scmp.lt.s32.totalorder %s35_s22, %s35_s22 }
  0x20   :  { %p2715_p0 = scmp.ne.s32.totalorder %s35_s22, %s2714_s30  ;;  %p2720_p2 = scmp.lt.s32.totalorder %s2714_s30, %s2714_s30 }
  0x22   :  { %p2721_p3 = por %p2720_p2, %p2719_p1 }
  0x24   :  { %p2722_p4 = pnand %p2721_p3, %p2715_p0 }
  0x26   :  { %2725 = shalt.err (!%p2722_p4)  }
  0x27   :  { %s2982_s3 = smov [#allocation5]  }
  0x28   :  { %37 = dma.vmem_to_smem %s35_s22, 16, %s2982_s3, [#allocation4] }
  0x29   :  { %2940 = dma.done.wait [#allocation4], 16 }
  0x2a   :  { %2941 = vsyncadd [#allocation4], 4294967280 }
  0x2b   :  { %39 = sfence }
  0x2c   :  { %40 = vsyncpa [#allocation7], 0 }
  0x2d   :  { %42 = vsyncpa [#allocation7 + $0x1], 0 }
  0x2e   :  { %43 = vsyncpa [#allocation8], 0 }
  0x2f   :  { %44 = vsyncpa [#allocation11], 0 }
  0x30   :  { %45 = vsyncpa [#allocation14], 0 }
  0x31   :  { %46 = vsyncpa [#allocation17], 0  ;;  %s3168_s6 = smov 0   ;;  %s3170_s10 = smov 0  }
  0x32   :  { %s3172_s0 = smov 0   ;;  %s3174_s11 = smov 0  }
  0x33 LB: > { %3799 = sst [smem:[#allocation26_spill]] %s2972_s10  ;;  %s3187_s22 = sadd.s32 4294967295, %s2980_s11   ;;  %s2980_s11 = sphi %s3174_s11, %s3866_s11   ;;  %s2976_s0 = sphi %s3172_s0, %s3869_s0   ;;  %s2972_s10 = sphi %s3170_s10, %s3868_s10   ;;  %s2968_s6 = sphi %s3168_s6, %s3867_s6  }
  0x34   : > { %3800 = sst [smem:[#allocation27_spill]] %s2976_s0  ;;  %s3753_s29 = sadd.s32 4294967294, %s2980_s11  }
  0x35   : > { %3801 = sst [smem:[#allocation28_spill]] %s2980_s11  ;;  %s3191_s2 = sadd.s32 1, %s2980_s11  }
  0x36   : > { %3802 = sst [smem:[#allocation29_spill]] %s3191_s2  ;;  %s395_s7 = sadd.s32 1, %s2976_s0 }
  0x37   : > { %s392_s12 = ssub.s32 %s2980_s11, %s3191_s2  ;;  %p402_p5 = scmp.ne.s32.totalorder %s2976_s0, %s2972_s10 }
  0x38   : > { %p393_p6 = scmp.eq.s32.totalorder %s392_s12, 0  ;;  %p403_p7 = scmp.eq.s32.totalorder %s2980_s11, 0 }
  0x39   : > { %p408_p8 = scmp.ne.s32.totalorder %s2972_s10, %s2968_s6  ;;  %p409_p9 = scmp.eq.s32.totalorder %s3187_s22, 0 }
  0x3a   : > { %s3202_s1 = scalar_select %p393_p6, %s2976_s0, %s395_s7  }
  0x3b   : > { %p404_p10 = por %p403_p7, %p402_p5  ;;  %p3204_p11 = por %p409_p9, %p408_p8 }
  0x3c   : > { %3803 = sst [smem:[#allocation30_spill]] %s3202_s1  ;;  %p3761_p12 = scmp.eq.s32.totalorder %s3187_s22, 2 }
  0x3d   : > { %s3804_s4 = scalar_select %p3204_p11, 1, 0 }
  0x3e   : > { %p611_p13 = scmp.eq.s32.totalorder %s3753_s29, 2  ;;  %p2544_p0 = scmp.lt.s32.totalorder %s2980_s11, 3 }
  0x3f   : > { %p3214_p1 = por %p3761_p12, %p402_p5  ;;  %s721_s9 = sand.u32 1, %s2976_s0  }
  0x40   : > { %p3218_p2 = por %p611_p13, %p408_p8  ;;  %s2247_s30 = sshll.u32 %s2980_s11, 6 }
  0x41   : > { %s3805_s8 = scalar_select %p3214_p1, 1, 0 }
  0x42   : > { %s3807_s5 = scalar_select %p3218_p2, 1, 0 }
  0x43   : > { %3806 = sst [smem:[#allocation31_spill]] %s3805_s8  ;;  %s2506_s3 = smul.u32 264, %s721_s9 }
  0x44   : > { %3808 = sst [smem:[#allocation32_spill]] %s3807_s5  ;;  %p3229_p3 = pnand %p2544_p0, %p404_p10 }
  0x45   : > { %s3809_s17 = sld [smem:[#allocation48_spill]]  ;;  %s725_s1 = scalar_lea.vmem [#allocation6], %s2506_s3 }
  0x46   : > { %s731_s2 = sshll.u32 %s725_s1, 4  ;;  %s3236_s0 = scalar_lea.sflag [#allocation7], %s721_s9  ;;  %s3233_s2 = int_to_ptr.vmem [resolvable:$true] %s731_s2 }
  0x47   : > { %p2728_p6 = pneg %p3229_p3 }
  0x4b   : > { %s3227_s12 = scalar_lea.hbm %s3809_s17, %s2247_s30  ;;  %s2731_s7 = scalar_lea.hbm %s3809_s17, 12672 }
  0x4c   : > { %s2726_s5 = scalar_lea.hbm %s3227_s12, 4224  ;;  %p2732_p9 = scmp.lt.s32.totalorder %s3227_s12, %s3809_s17 }
  0x4d   : > { %p2727_p5 = scmp.ne.s32.totalorder %s3227_s12, %s2726_s5  ;;  %p2733_p10 = scmp.lt.s32.totalorder %s2731_s7, %s2726_s5 }
  0x4f   : > { %p2729_p7 = pnand %p2728_p6, %p2727_p5  ;;  %p2734_p13 = por %p2733_p10, %p2732_p9 }
  0x51   : > { %p2730_p8 = pneg %p2729_p7 }
  0x53   : > { %p2735_p0 = pnand %p2734_p13, %p2730_p8 }
  0x55   : > { %2738 = shalt.err (!%p2735_p0)
}
  0x56   : > { %s2739_s1 = scalar_lea.vmem %s3233_s2, 4224  ;;  %s2983_s9 = smov [#allocation6]  }
  0x57   : > { %p2740_p12 = scmp.ne.s32.totalorder %s3233_s2, %s2739_s1  ;;  %s2744_s3 = sshll.u32 %s2983_s9, 4  ;;  %s2745_s3 = int_to_ptr.vmem [resolvable:$false] %s2744_s3 }
  0x58   : > { %s2746_s30 = scalar_lea.vmem %s2745_s3, 8448  ;;  %p2747_p7 = scmp.lt.s32.totalorder %s3233_s2, %s2745_s3 }
  0x59   : > { %p2742_p4 = pnand %p2740_p12, %p2728_p6  ;;  %p2748_p2 = scmp.lt.s32.totalorder %s2746_s30, %s2739_s1 }
  0x5b   : > { %p2743_p5 = pneg %p2742_p4  ;;  %p2749_p1 = por %p2748_p2, %p2747_p7 }
  0x5d   : > { %p2750_p11 = pnand %p2749_p1, %p2743_p5 }
  0x5f   : > { %2753 = shalt.err (!%p2750_p11)
}
  0x60   : > { %s2984_s26 = smov 192   ;;  %s2985_s8 = smov 64  }
  0x61   : > { %s2986_s5 = smov 4   ;;  %p746_p12 = scmp.lt.s32.totalorder %s2980_s11, 4 }
  0x62   : > { %2539 = dma.hbm_to_vmem [thread:$0]  (!%p3229_p3), %s3227_s12, 4224, %s3233_s2, %s3236_s0, %s2984_s26, %s2985_s8, %s2986_s5  }
  0x63   : > { %p3811_p4 = scmp.ge.s32.totalorder %s2980_s11, 1 }
  0x65   : > { %p747_p6 = pnand %p3811_p4, %p746_p12 }
  0x67   : > { %750 = sbr.rel (%p747_p6) target bundleno = 2384 (0x950), region = 92 }
  0x6c   : > { %s752_s6 = sand.u32 1, %s2972_s10   ;;  %p3812_p11 = scmp.ne.s32.totalorder %s3804_s4, 0 }
  0x6d   : > { %s2507_s7 = smul.u32 264, %s752_s6  ;;  %s753_s1 = scalar_lea.sflag [#allocation7], %s752_s6 }
  0x6f   : > { %s3261_s9 = scalar_lea.vmem [#allocation6], %s2507_s7 }
  0x70   : > { %2943 = dma.done.wait (%p3812_p11), %s753_s1, 4224  }
  0x71   : > { %2945 = vsyncadd (%p3812_p11), %s753_s1, 4294963072  ;;  %s2249_s29 = sshll.u32 %s752_s6, 3  ;;  %p831_p1 = scmp.lt.s32.totalorder %s3187_s22, 2 }
  0x72   : > { %s3813_s18 = sld [smem:[#allocation49_spill]]  ;;  %s3274_s26 = scalar_lea.vmem [#allocation18], %s2249_s29 }
  0x73   : > { %s832_s0 = scalar_select %p831_p1, %s3187_s22, 2 }
  0x74   : > { %3814 = sst [smem:[#allocation33_spill]] %s3274_s26  ;;  %p2251_p2 = scmp.ne.s32.totalorder %s3187_s22, 0 }
  0x75   : > { %s2250_s2 = sshll.u32 %s832_s0, 3  ;;  %s3815_s4 = sld [smem:[#allocation42_spill]] (!%p2251_p2) }
  0x76   : > { %839 = sbr.rel (%p2251_p2) target bundleno = 1673 (0x689), region = 100  ;;  %s3764_s7 = smov (!%p2251_p2), 32  }
  0x77   : > { %s3816_s0 = sld [smem:[#allocation43_spill]] (!%p2251_p2)  ;;  %s3767_s12 = smov (!%p2251_p2), 64  }
  0x78   : > { %s3272_s30 = scalar_lea.vmem %s3813_s18, %s2250_s2  ;;  %s3818_s3 = sld [smem:[#allocation36_spill]] (!%p2251_p2) }
  0x79   : > { %s3819_s6 = sld [smem:[#allocation35_spill]] (!%p2251_p2)  ;;  %s3826_s1 = smov (!%p2251_p2), 40  }
  0x7a   : > { %s3820_s29 = sld [smem:[#allocation44_spill]] (!%p2251_p2) }
  0x7b   : > { %v840_v0 = vld [vmem:[%s3815_s4] sm:$0xff]  ;;  %vm904_vm0 = vcmask 1043456   ;;  %v2988_v1 = vmov 0.0   ;;  %s3766_s4 = smov 40   ;;  %vm2990_vm1 = vmmov 0   ;;  %vm851_vm2 = vcmask 261120  }
  0x7c   : > { %844 = vrot.lane.b32.xlu0 %v840_v0, %s3764_s7  ;;  %2453 = vmatprep.subr.bf16.mxu0 %v2988_v1  ;;  %vm853_vm3 = vcmask 326656   ;;  %vm900_vm4 = vcmask 588800   ;;  %s3821_s5 = sld [smem:[#allocation37_spill]]  ;;  %vm1374_vm5 = vcmask 130048   ;;  %vm1146_vm6 = vcmask 1040384  }
  0x7d   : > { %s3817_s2 = smov %s3816_s0  ;;  %v2643_v2 = vld [vmem:[%s3816_s0 + $0x20] ss:$0 sps:$4 sm:$0xff]   ;;  %2467 = vmatprep.subr.bf16.mxu1 %v2988_v1  ;;  %2463 = vmatprep.mubr.msk.bf16.mxu0 %vm2990_vm1, %v2988_v1  ;;  %s3822_s16 = sld [smem:[#allocation47_spill]]  ;;  %vm1148_vm7 = vcmask 1041408   ;;  %vm1150_vm8 = vcmask 1042432   ;;  %vm1153_vm9 = vcmask 1044480  }
  0x7e   : > { %v842_v3 = vld [vmem:[%s3818_s3] sm:$0xff]  ;;  %v906_v4 = vsel %vm904_vm0, %v2643_v2, 0  ;;  %v2644_v5 = vld [vmem:[%s3817_s2 + $0x18] sm:$0xff]   ;;  %v2645_v6 = vld [vmem:[%s3817_s2 + $0x10] sm:$0xff]   ;;  %2471 = vmatprep.mubr.msk.bf16.mxu1 %vm2990_vm1, %v2988_v1  ;;  %s3827_s0 = smov 32   ;;  %s2269_s3 = sld [smem:[#allocation5 + $0x1]] }
  0x7f   : > { %2454 = vmatpush3.bf16.msra.mxu0 %v906_v4  ;;  %v2646_v7 = vld [vmem:[%s3817_s2 + $0x8] sm:$0xff]   ;;  %v2647_v8 = vld [vmem:[%s3817_s2] sm:$0xff]   ;;  %s2275_s8 = sld [smem:[#allocation5 + $0x2]]  ;;  %v2651_v4 = vld [vmem:[%s3736_s14 + $0x18] sm:$0xff]   ;;  %vm1155_vm10 = vcmask 1045504   ;;  %vm1157_vm11 = vcmask 1046528  }
  0x80   : > { %848 = vrot.lane.b32.xlu0 %v842_v3, %s3766_s4  ;;  %2455 = vmatprep.subr.bf16.mxu0 %v2988_v1  ;;  %v841_v10 = vld [vmem:[%s3819_s6] sm:$0xff]  ;;  %s3823_s4 = sld [smem:[#allocation41_spill]]  ;;  %vm1531_vm13 = vcmask 7168   ;;  %vm1513_vm15 = vcmask 523264  }
  0x81   : > { %v2252_v15 = vld [vmem:[%s3820_s29] ss:$0 sm:$0xff]  ;;  %s3824_s29 = sld [smem:[#allocation45_spill]]  ;;  %1533 = vst.msk [vmem:[%s3750_s28] sm:$0xff] %vm1531_vm13, %v2988_v1 }
  0x82   : > { %v855_v22 = vld [vmem:[%s3821_s5] sm:$0xff]  ;;  %s3825_s6 = sld [smem:[#allocation38_spill]] }
  0x83   : > { %2456 = vmatpush3.bf16.msra.mxu0 %v2644_v5  ;;  %v1299_v29 = vld [vmem:[%s3822_s16 + $0x18] sm:$0xff]  ;;  %v1298_v30 = vld [vmem:[%s3822_s16 + $0x10] sm:$0xff]  ;;  %v1297_v31 = vld [vmem:[%s3822_s16 + $0x8] sm:$0xff]  ;;  %s3377_s5 = sld [smem:[#allocation5 + $0x4]] }
  0x84   : > { %2457 = vmatprep.subr.bf16.mxu0 %v2988_v1  ;;  %v1296_v32 = vld [vmem:[%s3822_s16] sm:$0xff]  ;;  %p1077_p8 = scmp.gt.s32.totalorder %s2269_s3, 0  ;;  %p2270_p13 = scmp.lt.s32.totalorder %s2269_s3, 300 }
  0x85   : > { %p1084_p10 = scmp.gt.s32.totalorder %s2275_s8, 0  ;;  %p2276_p5 = scmp.lt.s32.totalorder %s2275_s8, 300  ;;  %v2650_v56 = vld [vmem:[%s3736_s14 + $0x20] ss:$0 sps:$4 sm:$0xff]  }
  0x86   : > { %v1295_v33 = vld [vmem:[%s3823_s4] sm:$0xff]  ;;  %s2281_s4 = sld [smem:[#allocation5 + $0x3]]  ;;  %v1215_v62 = vsel %vm904_vm0, %v2650_v56, 0 }
  0x87   : > { %2458 = vmatpush3.bf16.msra.mxu0 %v2645_v6  ;;  %v2648_v38 = vld [vmem:[%s3824_s29 + $0x8] sm:$0xff]   ;;  %v2649_v39 = vld [vmem:[%s3824_s29] sm:$0xff]   ;;  %s3382_s2 = sld [smem:[#allocation5 + $0x6]] }
  0x88   : > { %2459 = vmatprep.subr.bf16.mxu0 %v2988_v1  ;;  %2468 = vmatpush3.bf16.msra.mxu1 %v2648_v38  ;;  %v1159_v41 = vld [vmem:[%s3825_s6] sm:$0xff]  ;;  %s3379_s6 = sld [smem:[#allocation5 + $0x5]] }
  0x89   : > { %2469 = vmatprep.subr.bf16.mxu1 %v2988_v1  ;;  %p1098_p12 = scmp.gt.s32.totalorder %s3377_s5, 0  ;;  %s3384_s16 = sld [smem:[#allocation5 + $0x7]] }
  0x8a   : > { %p2288_p6 = scmp.lt.s32.totalorder %s3377_s5, 300 }
  0x8b   : > { %2460 = vmatpush3.bf16.msra.mxu0 %v2646_v7 }
  0x8c   : > { %2461 = vmatprep.subr.bf16.mxu0 %v2988_v1  ;;  %2470 = vmatpush3.bf16.msra.mxu1 %v2649_v39  ;;  %p1091_p0 = scmp.gt.s32.totalorder %s2281_s4, 0  ;;  %p2282_p7 = scmp.lt.s32.totalorder %s2281_s4, 300  ;;  %v2311_v39 = vld [vmem:[%s3737_s15] ss:$0 sm:$0xff] }
  0x8d   : > { %2475 = vmatprep.subr.bf16.mxu1 %v2988_v1  ;;  %p1112_p1 = scmp.gt.s32.totalorder %s3382_s2, 0  ;;  %p2300_p2 = scmp.lt.s32.totalorder %s3382_s2, 300 }
  0x8e   : > { %s3875_s4 = smov (!%p1091_p0, %s2281_s4), 0  ;;  %p1105_p4 = scmp.gt.s32.totalorder %s3379_s6, 0 }
  0x8f   : > { %2462 = vmatpush3.bf16.msra.mxu0 %v2647_v8  ;;  %s3881_s4 = smov (!%p2282_p7, %s3875_s4), 300  ;;  %p2294_p11 = scmp.lt.s32.totalorder %s3379_s6, 300 }
  0x90   : > { %2489 = vmatprep.subr.mxu0 %v2988_v1  ;;  %s1095_s26 = scalar_lea.vmem %s3735_s13, %s3881_s4  ;;  %s3883_s6 = smov (!%p1105_p4, %s3379_s6), 0 }
  0x91   : > { %s3887_s2 = smov (!%p1112_p1, %s3382_s2), 0  ;;  %s3889_s6 = smov (!%p2294_p11, %s3883_s6), 300  ;;  %v1096_v53 = vld [vmem:[%s1095_s26] sm:$0x1] }
  0x92   : > { %s3893_s2 = smov (!%p2300_p2, %s3887_s2), 300  ;;  %s1109_s10 = scalar_lea.vmem %s3735_s13, %s3889_s6  ;;  %v1132_v58 = vrot.slane %v1096_v53, 5 }
  0x93   : > { %v1110_v60 = vld [vmem:[%s1109_s10] sm:$0x1]  ;;  %s3828_s26 = smov 64   ;;  %s3830_s6 = sld [smem:[#allocation46_spill]] }
  0x94   : > { %v1138_v2 = vrot.slane %v1110_v60, 3  ;;  %v3005_v60 = vmov 14  }
  0x99   : > { %v2260_v56 = vld [vmem:[%s3830_s6] ss:$0 sm:$0xff] }
  0xee   : > { %v3312_v9 = vpop.permute.xlu0 %844 }
  0xef   : > { %v852_v11 = vsel %vm851_vm2, %v841_v10, %v3312_v9  ;;  %v2652_v10 = vld [vmem:[%s3736_s14 + $0x10] sm:$0xff]  }
  0xf2   : > { %v849_v12 = vpop.permute.xlu0 %848 }
  0xf3   : > { %v854_v13 = vsel %vm853_vm3, %v852_v11, %v849_v12 }
  0xf4   : > { %v856_v14 = vpack.c.bf16 %v854_v13, %v854_v13  ;;  %v2653_v13 = vld [vmem:[%s3736_s14 + $0x8] sm:$0xff]  }
  0xf6   : > { %2464 = vmatmul.mubr.msk.bf16.vlgmr.msra.gmra.mxu0 %vm900_vm4, %v856_v14 }
  0xf7   : > { %2497 = vmatprep.mubr.msk.f32.mxu0 %vm2990_vm1, %v2988_v1  ;;  %2490 = vmatpush3.msra.mxu0 %v1299_v29  ;;  %v2997_v29 = vmov 9  }
  0xf8   : > { %2491 = vmatprep.subr.mxu0 %v2988_v1 }
  0xf9   : > { %2492 = vmatpush3.msra.mxu0 %v1298_v30  ;;  %v2998_v30 = vmov 12  }
  0xfa   : > { %2493 = vmatprep.subr.mxu0 %v2988_v1 }
  0xfb   : > { %2494 = vmatpush3.msra.mxu0 %v1297_v31  ;;  %v2999_v31 = vmov 13  }
  0xfc   : > { %2495 = vmatprep.subr.mxu0 %v2988_v1 }
  0xfd   : > { %2496 = vmatpush3.msra.mxu0 %v1296_v32  ;;  %v3000_v32 = vmov 2  }
  0xfe   : > { %2498 = vmatmul.mubr.msk.f32.vlgmr.msra.gmra.mxu0 %vm851_vm2, %v1295_v33  ;;  %v3002_v33 = vmov 10  }
 0x1b6   : > { %v942_v16 = vpop.f32.mrf.mxu0 }
 0x1b7   : > { %v943_v17 = vadd.f32 %v2252_v15, %v942_v16  ;;  %v2654_v16 = vld [vmem:[%s3736_s14] sm:$0xff]  }
 0x1b8   : > { %v2465_v18 = vpop.f32.mrf.mxu0 }
 0x1b9   : > { %2655 = vtanh.f32 %v943_v17  ;;  %v2259_v23 = vmul.f32 -1.442695, %v943_v17 }
 0x1ba   : > { %v945_v19 = vpop.f32.mrf.mxu0 }
 0x1bb   : > { %2657 = vpow2.f32 %v2259_v23 }
 0x1bc   : > { %v2466_v20 = vpop.f32.mrf.mxu0 }
 0x1be   : > { %v3372_v45 = vpop.f32.mrf.mxu0 }
 0x1bf   : > { %v1373_v46 = vmul.f32 %v3372_v45, %v3372_v45 }
 0x1c0   : > { %v2499_v47 = vpop.f32.mrf.mxu0 }
 0x1c1   : > { %v1375_v48 = vsel %vm1374_vm5, %v1373_v46, 0.0 }
 0x1c6   : > { %v2656_v21 = vpop.eup %2655 }
 0x1c7   : > { %961 = vrot.lane.b32.xlu1 %v2656_v21, %s3767_s12 }
 0x1c8   : > { %v2658_v24 = vpop.eup %2657 }
 0x1c9   : > { %v951_v25 = vadd.f32 1.0, %v2658_v24 }
 0x1cb   : > { %956 = vrot.lane.b32.xlu1 %v855_v22, %s3764_s7  ;;  %2659 = vrcp.f32 %v951_v25  ;;  %v2993_v25 = vmov 4  }
 0x1d8   : > { %v2660_v26 = vpop.eup %2659 }
 0x239   : > { %v962_v27 = vpop.permute.xlu1 %961 }
 0x23a   : > { %v964_v28 = vmul.f32 %v2660_v26, %v962_v27  ;;  %v2995_v27 = vmov 8  }
 0x23c   : > { %966 = vrot.lane.b32.xlu0 %v964_v28, %s3764_s7  ;;  %s1069_s7 = sld [smem:[#allocation5]]  ;;  %v2996_v28 = vmov -inf  }
 0x23d   : > { %v957_v34 = vpop.permute.xlu1 %956  ;;  %1532 = vst.msk [vmem:[%s3749_s27] sm:$0xff] %vm1531_vm13, %v2996_v28  ;;  %1534 = vst.msk [vmem:[#allocation3] sm:$0xff] %vm1531_vm13, %v2996_v28 }
 0x23e   : > { %v959_v35 = vmul.f32 %v2660_v26, %v957_v34 }
 0x242   : > { %p1070_p3 = scmp.gt.s32.totalorder %s1069_s7, 0  ;;  %p2264_p9 = scmp.lt.s32.totalorder %s1069_s7, 300 }
 0x244   : > { %s3871_s7 = smov (!%p1070_p3, %s1069_s7), 0  ;;  %p1119_p3 = scmp.gt.s32.totalorder %s3384_s16, 0 }
 0x245   : > { %s3873_s7 = smov (!%p2264_p9, %s3871_s7), 300 }
 0x246   : > { %s1074_s11 = scalar_lea.vmem %s3735_s13, %s3873_s7  ;;  %s3829_s7 = sld [smem:[#allocation39_spill]] }
 0x247   : > { %v1075_v52 = vld [vmem:[%s1074_s11] sm:$0x1] }
 0x24c   : > { %v1166_v47 = vld [vmem:[%s3829_s7] sm:$0xff] }
 0x2ae   : > { %v967_v36 = vpop.permute.xlu0 %966 }
 0x2af   : > { %v3351_v37 = vadd.f32 %v967_v36, %v959_v35 }
 0x2b1   : > { %2661 = vtanh.f32 %v3351_v37 }
 0x2be   : > { %v2662_v40 = vpop.eup %2661 }
 0x2bf   : > { %972 = vrot.lane.b32.xlu1 %v2662_v40, %s3767_s12  ;;  %s1085_s12 = scalar_select %p1084_p10, %s2275_s8, 0 }
 0x2c1   : > { %s3879_s12 = smov (!%p2276_p5, %s1085_s12), 300 }
 0x2c2   : > { %s1088_s23 = scalar_lea.vmem %s3735_s13, %s3879_s12  ;;  %s1116_s12 = scalar_lea.vmem %s3735_s13, %s3893_s2 }
 0x2c3   : > { %1161 = vrot.lane.b32.xlu1 %v1159_v41, %s3826_s1  ;;  %s1078_s1 = scalar_select %p1077_p8, %s2269_s3, 0  ;;  %v1089_v50 = vld [vmem:[%s1088_s23] sm:$0x1] }
 0x2c4   : > { %s1099_s3 = scalar_select %p1098_p12, %s3377_s5, 0  ;;  %v1129_v54 = vrot.slane %v1089_v50, 6  ;;  %v1117_v3 = vld [vmem:[%s1116_s12] sm:$0x1] }
 0x2c5   : > { %s3877_s1 = smov (!%p2270_p13, %s1078_s1), 300  ;;  %p2306_p8 = scmp.lt.s32.totalorder %s3384_s16, 300  ;;  %v1141_v7 = vrot.slane %v1117_v3, 2 }
 0x2c6   : > { %s1081_s8 = scalar_lea.vmem %s3735_s13, %s3877_s1  ;;  %s3885_s3 = smov (!%p2288_p6, %s1099_s3), 300 }
 0x2c7   : > { %v1082_v49 = vld [vmem:[%s1081_s8] sm:$0x1]  ;;  %s1102_s20 = scalar_lea.vmem %s3735_s13, %s3885_s3  ;;  %s3891_s16 = smov (!%p1119_p3, %s3384_s16), 0 }
 0x2c8   : > { %v1126_v51 = vrot.slane %v1082_v49, 7  ;;  %v1103_v57 = vld [vmem:[%s1102_s20] sm:$0x1]  ;;  %s3895_s16 = smov (!%p2306_p8, %s3891_s16), 300  ;;  %s3009_s2 = smov 96  }
 0x2c9   : > { %v1135_v61 = vrot.slane %v1103_v57, 4  ;;  %s1123_s4 = scalar_lea.vmem %s3735_s13, %s3895_s16  ;;  %s3831_s3 = sld [smem:[#allocation40_spill]] }
 0x2ca   : > { %v1147_v55 = vsel %vm1146_vm6, %v1075_v52, %v1126_v51  ;;  %v1124_v6 = vld [vmem:[%s1123_s4] sm:$0x1] }
 0x2cb   : > { %v1149_v59 = vsel %vm1148_vm7, %v1147_v55, %v1129_v54  ;;  %v1144_v11 = vrot.slane %v1124_v6, 1  ;;  %v3004_v55 = vmov 3  }
 0x2cc   : > { %v1151_v63 = vsel %vm1150_vm8, %v1149_v59, %v1132_v58 }
 0x2cd   : > { %v1152_v5 = vsel %vm904_vm0, %v1151_v63, %v1135_v61  ;;  %v3006_v61 = vmov 7   ;;  %vm1515_vm0 = vcmask 785408  }
 0x2ce   : > { %v1154_v8 = vsel %vm1153_vm9, %v1152_v5, %v1138_v2  ;;  %v3008_v5 = vmov 11  }
 0x2cf   : > { %v1156_v12 = vsel %vm1155_vm10, %v1154_v8, %v1141_v7 }
 0x2d0   : > { %v1158_v14 = vsel %vm1157_vm11, %v1156_v12, %v1144_v11  ;;  %v1066_v11 = vld [vmem:[%s3831_s3] sm:$0xff] }
 0x2d1   : > { %v1164_v17 = vsel %vm851_vm2, %v1158_v14, %v3312_v9  ;;  %v2992_v9 = vmov 0  }
 0x2d2   : > { %2626 = vset.pattern.permute.xlu1 %v2992_v9  ;;  %1535 = vst.msk [vmem:[%s3741_s19] sm:$0xff] %vm1531_vm13, %v2992_v9 }
 0x2e7   : > { %1376 = vadd.xlane.f32.xlu1 %v1375_v48  ;;  %v3003_v48 = vmov 1  }
 0x2e8   : > { %2627 = vset.pattern.permute.xlu0 %v3003_v48 }
 0x331   : > { %v973_v42 = vpop.permute.xlu1 %972 }
 0x332   : > { %v3367_v43 = vmul.f32 %v2660_v26, %v973_v42  ;;  %v2994_v26 = vmov 5  }
 0x334   : > { %v976_v44 = vpack.c.bf16 %v3367_v43, %v3367_v43 }
 0x335   : > { %v1162_v15 = vpop.permute.xlu1 %1161 }
 0x336   : > { %989 = vrot.lane.b32.xlu0 %v976_v44, %s3827_s0  ;;  %v1165_v18 = vsel %vm853_vm3, %v1164_v17, %v1162_v15 }
 0x337   : > { %v1167_v19 = vpack.c.bf16 %v1165_v18, %v1165_v18 }
 0x370   : > { %v1377_v20 = vpop.xlane.xlu1 %1376 }
 0x371   : > { %v1378_v21 = vmax.f32 %v1377_v20, 1e-30  ;;  %vm1380_vm12 = vcmp.gt.f32.partialorder %v1377_v20, 1.0 }
 0x373   : > { %2663 = vrsqrt.f32 %v1378_v21 }
 0x380   : > { %v2664_v22 = vpop.eup %2663 }
 0x381   : > { %v1381_v23 = vsel %vm1380_vm12, %v2664_v22, 1.0 }
 0x382   : > { %v3450_v24 = vmul.f32 %v1381_v23, %v3372_v45 }
 0x384   : > { %1530 = vst.msk [vmem:[#allocation2 + $0x20] sm:$0xff] %vm1374_vm5, %v3450_v24  ;;  %1385 = vperm.xlu1 %2626, %v3450_v24  }
 0x388   : > { %2628 = vset.pattern.permute.xlu1 %v2993_v25 }
 0x389   : > { %1405 = vperm.xlu1 %2628, %v3450_v24  }
 0x38d   : > { %2629 = vset.pattern.permute.xlu1 %v2994_v26 }
 0x38e   : > { %1410 = vperm.xlu1 %2629, %v3450_v24  }
 0x392   : > { %2630 = vset.pattern.permute.xlu1 %v2995_v27 }
 0x393   : > { %1425 = vperm.xlu1 %2630, %v3450_v24  }
 0x397   : > { %2631 = vset.pattern.permute.xlu1 %v2997_v29 }
 0x398   : > { %1430 = vperm.xlu1 %2631, %v3450_v24  }
 0x39c   : > { %2632 = vset.pattern.permute.xlu1 %v2998_v30 }
 0x39d   : > { %1445 = vperm.xlu1 %2632, %v3450_v24  }
 0x3a1   : > { %2633 = vset.pattern.permute.xlu1 %v2999_v31 }
 0x3a2   : > { %1450 = vperm.xlu1 %2633, %v3450_v24  }
 0x3a6   : > { %2634 = vset.pattern.permute.xlu1 %v3000_v32 }
 0x3a7   : > { %1395 = vperm.xlu1 %2634, %v3450_v24  }
 0x3a8   : > { %v990_v0 = vpop.permute.xlu0 %989 }
 0x3a9   : > { %2472 = vmatmul.mubr.msk.bf16.vlgmr.msra.gmra.mxu1 %vm851_vm2, %v990_v0 }
 0x3aa   : > { %2476 = vmatpush3.bf16.msra.mxu1 %v1215_v62  ;;  %2485 = vmatprep.mubr.msk.bf16.mxu1 %vm2990_vm1, %v2988_v1  ;;  %v3007_v62 = vmov 15  }
 0x3ab   : > { %2477 = vmatprep.subr.bf16.mxu1 %v2988_v1 }
 0x3ae   : > { %2478 = vmatpush3.bf16.msra.mxu1 %v2651_v4 }
 0x3af   : > { %2479 = vmatprep.subr.bf16.mxu1 %v2988_v1 }
 0x3b2   : > { %2480 = vmatpush3.bf16.msra.mxu1 %v2652_v10 }
 0x3b3   : > { %2481 = vmatprep.subr.bf16.mxu1 %v2988_v1 }
 0x3b6   : > { %2482 = vmatpush3.bf16.msra.mxu1 %v2653_v13 }
 0x3b7   : > { %2483 = vmatprep.subr.bf16.mxu1 %v2988_v1  ;;  %v3001_v1 = vmov 6  }
 0x3b8   : > { %2635 = vset.pattern.permute.xlu1 %v3001_v1 }
 0x3b9   : > { %1415 = vperm.xlu1 %2635, %v3450_v24  }
 0x3ba   : > { %2484 = vmatpush3.bf16.msra.mxu1 %v2654_v16 }
 0x3bd   : > { %2486 = vmatmul.mubr.msk.bf16.vlgmr.msra.gmra.mxu1 %vm900_vm4, %v1167_v19  ;;  %2636 = vset.pattern.permute.xlu1 %v3002_v33 }
 0x3be   : > { %1435 = vperm.xlu1 %2636, %v3450_v24  }
 0x3c2   : > { %2638 = vset.pattern.permute.xlu1 %v3004_v55 }
 0x3ff   : > { %v1386_v15 = vpop.permute.xlu1 %1385 }
 0x404   : > { %v1406_v17 = vpop.permute.xlu1 %1405 }
 0x409   : > { %v1411_v18 = vpop.permute.xlu1 %1410 }
 0x40e   : > { %v1426_v19 = vpop.permute.xlu1 %1425 }
 0x413   : > { %v1431_v20 = vpop.permute.xlu1 %1430 }
 0x418   : > { %v1446_v21 = vpop.permute.xlu1 %1445 }
 0x41d   : > { %v1451_v22 = vpop.permute.xlu1 %1450 }
 0x422   : > { %v1396_v23 = vpop.permute.xlu1 %1395 }
 0x469   : > { %v1040_v34 = vpop.f32.mrf.mxu1 }
 0x46a   : > { %v1041_v57 = vadd.f32 %v2260_v56, %v1040_v34 }
 0x46b   : > { %v2473_v35 = vpop.f32.mrf.mxu1 }
 0x46c   : > { %v1046_v58 = vmul.f32 %v1041_v57, %v1041_v57 }
 0x46d   : > { %v1043_v36 = vpop.f32.mrf.mxu1 }
 0x46e   : > { %v1047_v59 = vsel %vm851_vm2, %v1046_v58, 0.0 }
 0x46f   : > { %v2474_v38 = vpop.f32.mrf.mxu1 }
 0x47d   : > { %v1251_v40 = vpop.f32.mrf.mxu1 }
 0x47e   : > { %v1252_v41 = vadd.f32 %v2311_v39, %v1251_v40 }
 0x47f   : > { %v2487_v42 = vpop.f32.mrf.mxu1 }
 0x480   : > { %2665 = vtanh.f32 %v1252_v41  ;;  %v2318_v49 = vmul.f32 -1.442695, %v1252_v41 }
 0x481   : > { %v1254_v44 = vpop.f32.mrf.mxu1 }
 0x482   : > { %2667 = vpow2.f32 %v2318_v49 }
 0x483   : > { %v2488_v45 = vpop.f32.mrf.mxu1 }
 0x48d   : > { %v2666_v46 = vpop.eup %2665 }
 0x48e   : > { %1270 = vrot.lane.b32.xlu0 %v2666_v46, %s3828_s26 }
 0x48f   : > { %v2668_v50 = vpop.eup %2667 }
 0x490   : > { %v1260_v51 = vadd.f32 1.0, %v2668_v50 }
 0x492   : > { %1265 = vrot.lane.b32.xlu0 %v1166_v47, %s3827_s0  ;;  %2669 = vrcp.f32 %v1260_v51 }
 0x49f   : > { %v3482_v52 = vpop.eup %2669 }
 0x500   : > { %v1271_v53 = vpop.permute.xlu0 %1270 }
 0x501   : > { %v1273_v54 = vmul.f32 %v3482_v52, %v1271_v53 }
 0x503   : > { %1275 = vrot.lane.b32.xlu0 %v1273_v54, %s3827_s0 }
 0x504   : > { %v1266_v63 = vpop.permute.xlu0 %1265 }
 0x505   : > { %v1268_v0 = vmul.f32 %v3482_v52, %v1266_v63 }
 0x522   : > { %1048 = vadd.xlane.f32.xlu0 %v1047_v59 }
 0x538   : > { %1390 = vperm.xlu0 %2627, %v3450_v24  }
 0x53c   : > { %2637 = vset.pattern.permute.xlu0 %v3005_v60 }
 0x53d   : > { %1455 = vperm.xlu0 %2637, %v3450_v24  }
 0x541   : > { %2639 = vset.pattern.permute.xlu0 %v3006_v61 }
 0x542   : > { %1420 = vperm.xlu0 %2639, %v3450_v24  }
 0x546   : > { %1056 = vrot.lane.b32.xlu0 %v3367_v43, %s3827_s0 }
 0x547   : > { %2642 = vset.pattern.permute.xlu0 %v3007_v62 }
 0x575   : > { %v1276_v2 = vpop.permute.xlu0 %1275 }
 0x576   : > { %v3496_v3 = vadd.f32 %v1276_v2, %v1268_v0 }
 0x578   : > { %2671 = vtanh.f32 %v3496_v3 }
 0x585   : > { %v2672_v4 = vpop.eup %2671 }
 0x586   : > { %1281 = vrot.lane.b32.xlu1 %v2672_v4, %s3828_s26 }
 0x58a   : > { %1400 = vperm.xlu1 %2638, %v3450_v24  }
 0x58e   : > { %2640 = vset.pattern.permute.xlu1 %v3008_v5 }
 0x58f   : > { %1440 = vperm.xlu1 %2640, %v3450_v24  }
 0x593   : > { %2641 = vset.pattern.permute.xlu1 %v3007_v62 }
 0x594   : > { %1460 = vperm.xlu1 %2641, %v3450_v24   ;;  %v1416_v24 = vpop.permute.xlu1 %1415 }
 0x598   : > { %1061 = vrot.lane.b32.xlu1 %v3351_v37, %s3009_s2  ;;  %v1436_v9 = vpop.permute.xlu1 %1435 }
 0x5ab   : > { %v1049_v43 = vpop.xlane.xlu0 %1048 }
 0x5ac   : > { %v1050_v6 = vmax.f32 %v1049_v43, 1e-30  ;;  %vm1052_vm14 = vcmp.gt.f32.partialorder %v1049_v43, 1.0 }
 0x5ae   : > { %2673 = vrsqrt.f32 %v1050_v6 }
 0x5b3   : > { %v1391_v7 = vpop.permute.xlu0 %1390 }
 0x5b8   : > { %v1456_v8 = vpop.permute.xlu0 %1455 }
 0x5bb   : > { %v2674_v10 = vpop.eup %2673 }
 0x5bc   : > { %v1053_v12 = vsel %vm1052_vm14, %v2674_v10, 1.0 }
 0x5bd   : > { %v1054_v13 = vmul.f32 %v1053_v12, %v1041_v57  ;;  %v1421_v14 = vpop.permute.xlu0 %1420 }
 0x5bf   : > { %1065 = vst.msk [vmem:[#allocation16] sm:$0xff] %vm851_vm2, %v1054_v13  ;;  %v1067_v16 = vadd.f32 %v1066_v11, %v1054_v13 }
 0x5c1   : > { %1068 = vst.msk [vmem:[#allocation15] sm:$0xff] %vm851_vm2, %v1067_v16  ;;  %v1057_v37 = vpop.permute.xlu0 %1056 }
 0x5c2   : > { %1059 = vst.msk [vmem:[#allocation9] sm:$0xff] %vm851_vm2, %v1057_v37 }
 0x5f8   : > { %v1282_v25 = vpop.permute.xlu1 %1281 }
 0x5f9   : > { %v1284_v26 = vmul.f32 %v3482_v52, %v1282_v25 }
 0x5fb   : > { %v1393_v27 = vmul.f32 %v1391_v7, %v1284_v26  ;;  %v1388_v28 = vmul.f32 %v1386_v15, %v1284_v26  ;;  %v1423_v29 = vmul.f32 %v1421_v14, %v1284_v26  ;;  %v1413_v30 = vmul.f32 %v1411_v18, %v1284_v26 }
 0x5fc   : > { %v1408_v31 = vmul.f32 %v1406_v17, %v1284_v26  ;;  %v1433_v32 = vmul.f32 %v1431_v20, %v1284_v26  ;;  %v1428_v1 = vmul.f32 %v1426_v19, %v1284_v26  ;;  %v1453_v35 = vmul.f32 %v1451_v22, %v1284_v26 }
 0x5fd   : > { %1469 = vrot.lane.b32.xlu1 %v1393_v27, %s3828_s26  ;;  %1465 = vrot.lane.b32.xlu0 %v1388_v28, %s3827_s0  ;;  %v1448_v36 = vmul.f32 %v1446_v21, %v1284_v26  ;;  %v1418_v40 = vmul.f32 %v1416_v24, %v1284_v26  ;;  %v1398_v41 = vmul.f32 %v1396_v23, %v1284_v26 }
 0x5fe   : > { %v1458_v44 = vmul.f32 %v1456_v8, %v1284_v26  ;;  %v1438_v45 = vmul.f32 %v1436_v9, %v1284_v26 }
 0x601   : > { %1481 = vrot.lane.b32.xlu1 %v1413_v30, %s3828_s26  ;;  %1477 = vrot.lane.b32.xlu0 %v1408_v31, %s3827_s0 }
 0x605   : > { %1493 = vrot.lane.b32.xlu1 %v1433_v32, %s3828_s26  ;;  %1489 = vrot.lane.b32.xlu0 %v1428_v1, %s3827_s0  ;;  %v1401_v33 = vpop.permute.xlu1 %1400 }
 0x606   : > { %v1403_v34 = vmul.f32 %v1401_v33, %v1284_v26 }
 0x609   : > { %1505 = vrot.lane.b32.xlu1 %v1453_v35, %s3828_s26  ;;  %1501 = vrot.lane.b32.xlu0 %v1448_v36, %s3827_s0 }
 0x60a   : > { %v1441_v38 = vpop.permute.xlu1 %1440 }
 0x60b   : > { %v1443_v39 = vmul.f32 %v1441_v38, %v1284_v26 }
 0x60d   : > { %1485 = vrot.lane.b32.xlu1 %v1418_v40, %s3009_s2  ;;  %1473 = vrot.lane.b32.xlu0 %v1398_v41, %s3009_s2 }
 0x60f   : > { %v1461_v42 = vpop.permute.xlu1 %1460 }
 0x610   : > { %v1463_v46 = vmul.f32 %v1461_v42, %v1284_v26 }
 0x611   : > { %1509 = vrot.lane.b32.xlu1 %v1458_v44, %s3009_s2  ;;  %1497 = vrot.lane.b32.xlu0 %v1438_v45, %s3009_s2 }
 0x613   : > { %v1062_v47 = vpop.permute.xlu1 %1061 }
 0x614   : > { %1064 = vst.msk [vmem:[#allocation10] sm:$0xff] %vm851_vm2, %v1062_v47 }
 0x615   : > { %1291 = vrot.lane.b32.xlu1 %v3496_v3, %s3009_s2  ;;  %1286 = vrot.lane.b32.xlu0 %v1284_v26, %s3827_s0 }
 0x66f   : > { %v1466_v48 = vpop.permute.xlu0 %1465  ;;  %v1470_v49 = vpop.permute.xlu1 %1469 }
 0x670   : > { %v1512_v56 = vsel %vm851_vm2, %v1466_v48, %v1470_v49 }
 0x673   : > { %v1478_v50 = vpop.permute.xlu0 %1477  ;;  %v1482_v51 = vpop.permute.xlu1 %1481 }
 0x674   : > { %v1517_v57 = vsel %vm851_vm2, %v1478_v50, %v1482_v51 }
 0x677   : > { %v1490_v52 = vpop.permute.xlu0 %1489  ;;  %v1494_v53 = vpop.permute.xlu1 %1493 }
 0x678   : > { %v1520_v0 = vsel %vm851_vm2, %v1490_v52, %v1494_v53 }
 0x67b   : > { %v1502_v54 = vpop.permute.xlu0 %1501  ;;  %v1506_v55 = vpop.permute.xlu1 %1505 }
 0x67c   : > { %v1523_v2 = vsel %vm851_vm2, %v1502_v54, %v1506_v55 }
 0x67f   : > { %v1474_v58 = vpop.permute.xlu0 %1473  ;;  %v1486_v59 = vpop.permute.xlu1 %1485 }
 0x680   : > { %v1514_v60 = vsel %vm1513_vm15, %v1512_v56, %v1474_v58  ;;  %v1518_v61 = vsel %vm1513_vm15, %v1517_v57, %v1486_v59 }
 0x681   : > { %v1516_v62 = vsel %vm1515_vm0, %v1514_v60, %v1403_v34  ;;  %v1519_v63 = vsel %vm1515_vm0, %v1518_v61, %v1423_v29 }
 0x682   : > { %1526 = vst [vmem:[#allocation2] sm:$0xff] %v1516_v62  ;;  %1527 = vst [vmem:[#allocation2 + $0x8] sm:$0xff] %v1519_v63 }
 0x683   : > { %v1498_v3 = vpop.permute.xlu0 %1497  ;;  %v1510_v4 = vpop.permute.xlu1 %1509 }
 0x684   : > { %v1521_v5 = vsel %vm1513_vm15, %v1520_v0, %v1498_v3  ;;  %v1524_v43 = vsel %vm1513_vm15, %v1523_v2, %v1510_v4 }
 0x685   : > { %v1522_v6 = vsel %vm1515_vm0, %v1521_v5, %v1443_v39  ;;  %v1525_v7 = vsel %vm1515_vm0, %v1524_v43, %v1463_v46 }
 0x686   : > { %1528 = vst [vmem:[#allocation2 + $0x10] sm:$0xff] %v1522_v6  ;;  %1529 = vst [vmem:[#allocation2 + $0x18] sm:$0xff] %v1525_v7 }
 0x687   : > { %v1287_v8 = vpop.permute.xlu0 %1286  ;;  %v1292_v10 = vpop.permute.xlu1 %1291 }
 0x688   : > { %1289 = vst.msk [vmem:[#allocation12] sm:$0xff] %vm851_vm2, %v1287_v8  ;;  %1294 = vst.msk [vmem:[#allocation13] sm:$0xff] %vm851_vm2, %v1292_v10 }
 0x689 PF: > { %v2677_v11 = vld [vmem:[%s3261_s9 + $0x78] sm:$0xff]   ;;  %v2681_v15 = vld [vmem:[%s3261_s9 + $0x70] sm:$0xff]   ;;  %v2685_v18 = vld [vmem:[%s3261_s9 + $0x68] sm:$0xff]   ;;  %v3010_v49 = vmov 0.0   ;;  %vm3011_vm1 = vmmov 0   ;;  %vm1810_vm2 = vcmask 130048   ;;  %v1935_v54 = vlaneseq }
 0x68a   : > { %v2678_v12 = vld [vmem:[%s3261_s9 + $0xf8] sm:$0xff]   ;;  %2407 = vmatprep.subr.bf16.mxu0 %v2677_v11  ;;  %v2682_v16 = vld [vmem:[%s3261_s9 + $0xf0] sm:$0xff]   ;;  %v2686_v19 = vld [vmem:[%s3261_s9 + $0xe8] sm:$0xff]   ;;  %s2354_s0 = sshll.u32 %s3187_s22, 7  ;;  %vm1962_vm4 = vcmask 7168   ;;  %s3013_s20 = smov [#allocation9]  }
 0x68b   : > { %v2679_v13 = vld [vmem:[%s3261_s9 + $0x38] sm:$0xff]   ;;  %2429 = vmatprep.subr.bf16.mxu1 %v2678_v12  ;;  %v2683_v37 = vld [vmem:[%s3261_s9 + $0x30] sm:$0xff]   ;;  %v2687_v20 = vld [vmem:[%s3261_s9 + $0x28] sm:$0xff]   ;;  %v1936_v57 = vand.u32 127, %v1935_v54  ;;  %v1937_v58 = vstv %s2354_s0  ;;  %s2008_s21 = sshll.u32 %s3013_s20, 4  ;;  %s3014_s23 = smov [#allocation10]   ;;  %s2009_s21 = int_to_ptr.vmem [resolvable:$true] %s2008_s21 }
 0x68c   : > { %v2680_v14 = vld [vmem:[%s3261_s9 + $0xb8] sm:$0xff]   ;;  %2408 = vmatpush3.bf16.msra.mxu0 %v2679_v13  ;;  %v2684_v17 = vld [vmem:[%s3261_s9 + $0xb0] sm:$0xff]   ;;  %v2688_v21 = vld [vmem:[%s3261_s9 + $0xa8] sm:$0xff]   ;;  %s2019_s24 = sshll.u32 %s3014_s23, 4  ;;  %s2754_s25 = scalar_lea.vmem %s2009_s21, 128  ;;  %s2020_s24 = int_to_ptr.vmem [resolvable:$true] %s2019_s24 }
 0x68d   : > { %2430 = vmatpush3.bf16.msra.mxu1 %v2680_v14  ;;  %2409 = vmatprep.subr.bf16.mxu0 %v2681_v15  ;;  %v2689_v22 = vld [vmem:[%s3261_s9 + $0x60] sm:$0xff]   ;;  %v2693_v25 = vld [vmem:[%s3261_s9 + $0x58] sm:$0xff]   ;;  %v2697_v29 = vld [vmem:[%s3261_s9 + $0x50] sm:$0xff]   ;;  %v1938_v2 = vadd.s32 %v1937_v58, %v1936_v57  ;;  %v3012_v14 = vmov 0   ;;  %p2755_p9 = scmp.ne.s32.totalorder %s2009_s21, %s2754_s25  ;;  %p3833_p10 = scmp.eq.s32.totalorder %s3187_s22, 2 }
 0x68e   : > { %2431 = vmatprep.subr.bf16.mxu1 %v2682_v16  ;;  %v2690_v23 = vld [vmem:[%s3261_s9 + $0xe0] sm:$0xff]   ;;  %v2694_v26 = vld [vmem:[%s3261_s9 + $0xd8] sm:$0xff]   ;;  %v2698_v30 = vld [vmem:[%s3261_s9 + $0xd0] sm:$0xff]   ;;  %2675 = vset.pattern.permute.xlu1 %v3012_v14  ;;  %p2761_p5 = scmp.lt.s32.totalorder %s2009_s21, %s2009_s21  ;;  %p2762_p7 = scmp.lt.s32.totalorder %s2754_s25, %s2754_s25 }
 0x68f   : > { %v2691_v24 = vld [vmem:[%s3261_s9 + $0x20] sm:$0xff]   ;;  %v2695_v27 = vld [vmem:[%s3261_s9 + $0x18] sm:$0xff]   ;;  %v2699_v31 = vld [vmem:[%s3261_s9 + $0x10] sm:$0xff]   ;;  %vm1939_vm3 = vcmp.lt.s32.totalorder %v1938_v2, 300  ;;  %2676 = vset.pattern.permute.xlu0 %v3012_v14  ;;  %p2756_p13 = pnand %p2755_p9, %p3833_p10 }
 0x690   : > { %2410 = vmatpush3.bf16.msra.mxu0 %v2683_v37  ;;  %v2692_v9 = vld [vmem:[%s3261_s9 + $0xa0] sm:$0xff]   ;;  %v2696_v28 = vld [vmem:[%s3261_s9 + $0x98] sm:$0xff]   ;;  %v2700_v32 = vld [vmem:[%s3261_s9 + $0x90] sm:$0xff]   ;;  %p2763_p12 = por %p2762_p7, %p2761_p5 }
 0x691   : > { %2432 = vmatpush3.bf16.msra.mxu1 %v2684_v17  ;;  %2411 = vmatprep.subr.bf16.mxu0 %v2685_v18  ;;  %v2701_v1 = vld [vmem:[%s3261_s9 + $0x48] sm:$0xff]   ;;  %v2705_v36 = vld [vmem:[%s3261_s9 + $0x40] sm:$0xff]   ;;  %v1537_v41 = vld [vmem:[#allocation2 + $0x8] sm:$0xff]  ;;  %p2757_p0 = pneg %p2756_p13 }
 0x692   : > { %2433 = vmatprep.subr.bf16.mxu1 %v2686_v19  ;;  %v2702_v33 = vld [vmem:[%s3261_s9 + $0xc8] sm:$0xff]   ;;  %v2706_v38 = vld [vmem:[%s3261_s9 + $0xc0] sm:$0xff]   ;;  %v1542_v45 = vpack.c.bf16 %v1537_v41, %v1537_v41  ;;  %v3588_v17 = vld [vmem:[#allocation3] sm:$0xff] }
 0x693   : > { %v2703_v34 = vld [vmem:[%s3261_s9 + $0x8] sm:$0xff]   ;;  %v2707_v39 = vld [vmem:[%s3261_s9] sm:$0xff]   ;;  %p2764_p4 = pnand %p2763_p12, %p2757_p0 }
 0x694   : > { %2412 = vmatpush3.bf16.msra.mxu0 %v2687_v20  ;;  %v2704_v35 = vld [vmem:[%s3261_s9 + $0x88] sm:$0xff]   ;;  %v2708_v40 = vld [vmem:[%s3261_s9 + $0x80] sm:$0xff]   ;;  %1846 = vmatprep.mubr.bf16.mxu0 %v1542_v45 }
 0x695   : > { %2434 = vmatpush3.bf16.msra.mxu1 %v2688_v21  ;;  %2413 = vmatprep.subr.bf16.mxu0 %v2689_v22  ;;  %v1539_v42 = vld [vmem:[#allocation2 + $0x18] sm:$0xff]  ;;  %v1536_v44 = vld [vmem:[#allocation2] sm:$0xff]  ;;  %v1538_v48 = vld [vmem:[#allocation2 + $0x10] sm:$0xff] }
 0x696   : > { %2435 = vmatprep.subr.bf16.mxu1 %v2690_v23  ;;  %v1544_v46 = vpack.c.bf16 %v1539_v42, %v1539_v42  ;;  %v1541_v47 = vpack.c.bf16 %v1536_v44, %v1536_v44  ;;  %v1543_v50 = vpack.c.bf16 %v1538_v48, %v1538_v48  ;;  %v2709_v51 = vld [vmem:[%s3261_s9 + $0x100] sm:$0xff]   ;;  %v1540_v52 = vld [vmem:[#allocation2 + $0x20] sm:$0xff]  ;;  %s3832_s9 = sld [smem:[#allocation33_spill]] }
 0x697   : > { %v1545_v53 = vpack.c.bf16 %v1540_v52, %v1540_v52  ;;  %v1965_v10 = vld [vmem:[%s3272_s30] sm:$0xff] }
 0x698   : > { %2414 = vmatpush3.bf16.msra.mxu0 %v2691_v24  ;;  %1886 = vmatprep.mubr.bf16.mxu1 %v1544_v46  ;;  %v3583_v15 = vld [vmem:[%s3749_s27] sm:$0xff] }
 0x699   : > { %2436 = vmatpush3.bf16.msra.mxu1 %v2692_v9  ;;  %2415 = vmatprep.subr.bf16.mxu0 %v2693_v25 }
 0x69a   : > { %2437 = vmatprep.subr.bf16.mxu1 %v2694_v26 }
 0x69c   : > { %2416 = vmatpush3.bf16.msra.mxu0 %v2695_v27 }
 0x69d   : > { %2438 = vmatpush3.bf16.msra.mxu1 %v2696_v28  ;;  %2417 = vmatprep.subr.bf16.mxu0 %v2697_v29 }
 0x69e   : > { %2439 = vmatprep.subr.bf16.mxu1 %v2698_v30 }
 0x6a0   : > { %2418 = vmatpush3.bf16.msra.mxu0 %v2699_v31 }
 0x6a1   : > { %2440 = vmatpush3.bf16.msra.mxu1 %v2700_v32  ;;  %2419 = vmatprep.subr.bf16.mxu0 %v2701_v1 }
 0x6a2   : > { %2441 = vmatprep.subr.bf16.mxu1 %v2702_v33 }
 0x6a4   : > { %2420 = vmatpush3.bf16.msra.mxu0 %v2703_v34 }
 0x6a5   : > { %2442 = vmatpush3.bf16.msra.mxu1 %v2704_v35  ;;  %2421 = vmatprep.subr.bf16.mxu0 %v2705_v36 }
 0x6a6   : > { %2443 = vmatprep.subr.bf16.mxu1 %v2706_v38 }
 0x6a8   : > { %2422 = vmatpush3.bf16.msra.mxu0 %v2707_v39 }
 0x6a9   : > { %2444 = vmatpush3.bf16.msra.mxu1 %v2708_v40  ;;  %2500 = vmatprep.subr.bf16.mxu0 %v3010_v49 }
 0x6ab   : > { %1847 = vmatmul.mubr.bf16.vlgmr.msra.gmra.mxu0 %v1541_v47 }
 0x6ac   : > { %1887 = vmatmul.mubr.bf16.vlgmr.msra.gmra.mxu1 %v1543_v50  ;;  %2501 = vmatpush3.bf16.msra.mxu0 %v2709_v51 }
 0x6ad   : > { %2502 = vmatprep.mubr.msk.bf16.mxu0 %vm3011_vm1, %v3010_v49 }
 0x6b3   : > { %2503 = vmatmul.mubr.msk.bf16.vlgmr.msra.gmra.mxu0 %vm1810_vm2, %v1545_v53 }
 0x76b   : > { %v2423_v55 = vpop.f32.mrf.mxu0 }
 0x76c   : > { %v2445_v56 = vpop.f32.mrf.mxu1 }
 0x76d   : > { %v2424_v59 = vpop.f32.mrf.mxu0 }
 0x76e   : > { %v2446_v60 = vpop.f32.mrf.mxu1  ;;  %v2425_v61 = vadd.f32 %v2424_v59, %v2423_v55 }
 0x76f   : > { %v2447_v62 = vadd.f32 %v2446_v60, %v2445_v56  ;;  %v2426_v63 = vpop.f32.mrf.mxu0 }
 0x770   : > { %v2448_v0 = vpop.f32.mrf.mxu1 }
 0x771   : > { %v2427_v3 = vpop.f32.mrf.mxu0  ;;  %v1889_v5 = vadd.f32 %v2447_v62, %v2425_v61 }
 0x772   : > { %v2449_v4 = vpop.f32.mrf.mxu1 }
 0x773   : > { %v1928_v43 = vpop.f32.mrf.mxu0 }
 0x774   : > { %v1929_v6 = vadd.f32 %v1928_v43, %v1889_v5 }
 0x775   : > { %v2504_v7 = vpop.f32.mrf.mxu0 }
 0x776   : > { %v1940_v8 = vsel %vm1939_vm3, %v1929_v6, -inf }
 0x777   : > { %1941 = vst [vmem:[%s3832_s9] sm:$0xff] %v1940_v8  ;;  %v1931_v11 = vpop.f32.mrf.mxu0  ;;  %1943 = vmax.xlane.f32.xlu0 %v1940_v8  ;;  %v1966_v13 = vadd.f32 %v1965_v10, %v1940_v8 }
 0x779   : > { %v2505_v12 = vpop.f32.mrf.mxu0 }
 0x77b   : > { %1967 = vmax.xlane.f32.xlu0 %v1966_v13 }
 0x800   : > { %v1944_v16 = vpop.xlane.xlu0 %1943 }
 0x801   : > { %v3586_v37 = vmax.f32 %v3583_v15, %v1944_v16 }
 0x803   : > { %v1954_v18 = vsub.f32 %v3583_v15, %v3586_v37  ;;  %1964 = vst.msk [vmem:[%s3749_s27] sm:$0xff] %vm1962_vm4, %v3586_v37  ;;  %1948 = vperm.xlu1 %2675, %v3586_v37  }
 0x804   : > { %v3598_v19 = vpop.xlane.xlu0 %1967 }
 0x805   : > { %v1991_v20 = vmax.f32 %v3588_v17, %v3598_v19  ;;  %vm1969_vm5 = vcmp.ge.f32.partialorder %v1966_v13, %v3598_v19 }
 0x806   : > { %v1970_v21 = vsel %vm1969_vm5, %v1938_v2, 1073741824 }
 0x807   : > { %1992 = vst.msk [vmem:[#allocation3] sm:$0xff] %vm1962_vm4, %v1991_v20  ;;  %v1972_v22 = vshra.s32 %v1970_v21, 16  ;;  %v1971_v26 = vand.u32 65535, %v1970_v21 }
 0x809   : > { %v1974_v23 = vcvt.s32.f32 %v1972_v22  ;;  %v1973_v28 = vcvt.s32.f32 %v1971_v26 }
 0x827   : > { %1975 = vmin.xlane.f32.xlu1 %v1974_v23 }
 0x87e   : > { %v1949_v24 = vpop.permute.xlu1 %1948 }
 0x87f   : > { %v1951_v9 = vsub.f32 %v1940_v8, %v1949_v24 }
 0x881   : > { %v1952_v25 = vmul.f32 1.442695, %v1951_v9 }
 0x883   : > { %2710 = vpow2.f32 %v1952_v25 }
 0x890   : > { %v2711_v30 = vpop.eup %2710 }
 0x8b0   : > { %v3604_v27 = vpop.xlane.xlu1 %1975 }
 0x8b1   : > { %vm1977_vm6 = vcmp.eq.f32.partialorder %v1974_v23, %v3604_v27 }
 0x8b2   : > { %v1978_v29 = vsel %vm1977_vm6, %v1973_v28, inf }
 0x8b3   : > { %1979 = vmin.xlane.f32.xlu0 %v1978_v29 }
 0x8b7   : > { %1959 = vadd.xlane.f32.xlu0 %v2711_v30 }
 0x8b8   : > { %2767 = shalt.err (!%p2764_p4)
}
 0x8b9   : > { %p3834_p6 = pmov %p3833_p10  ;;  %s3835_s26 = sld [smem:[#allocation50_spill]] }
 0x8ba   : > { %s2778_s12 = scalar_lea.vmem %s2020_s24, 128  ;;  %p2785_p8 = scmp.lt.s32.totalorder %s2020_s24, %s2020_s24 }
 0x8bb   : > { %p2779_p11 = scmp.ne.s32.totalorder %s2020_s24, %s2778_s12  ;;  %p3836_p1 = pmov %p3834_p6 }
 0x8bc   : > { %p2786_p9 = scmp.lt.s32.totalorder %s2778_s12, %s2778_s12 }
 0x8bd   : > { %p2780_p2 = pnand %p2779_p11, %p3836_p1 }
 0x8be   : > { %p2787_p10 = por %p2786_p9, %p2785_p8 }
 0x8bf   : > { %2511 = dma.vmem_to_hbm [thread:$0]  (%p3834_p6), %s2009_s21, 128, %s3835_s26, [#allocation8]  }
 0x8c0   : > { %p2781_p3 = pneg %p2780_p2 }
 0x8c2   : > { %p2788_p13 = pnand %p2787_p10, %p2781_p3 }
 0x8c4   : > { %2791 = shalt.err (!%p2788_p13)
}
 0x8c5   : > { %p3837_p0 = pmov %p3836_p1  ;;  %s3838_s4 = sld [smem:[#allocation51_spill]] }
 0x8c6   : > { %s3015_s5 = smov [#allocation13]   ;;  %s3016_s2 = smov [#allocation12]  }
 0x8c7   : > { %s2041_s6 = sshll.u32 %s3015_s5, 4  ;;  %s2030_s16 = sshll.u32 %s3016_s2, 4  ;;  %s2042_s6 = int_to_ptr.vmem [resolvable:$true] %s2041_s6  ;;  %s2031_s16 = int_to_ptr.vmem [resolvable:$true] %s2030_s16 }
 0x8c8   : > { %s2802_s1 = scalar_lea.vmem %s2042_s6, 128  ;;  %p3839_p7 = pmov %p3837_p0 }
 0x8c9   : > { %p2803_p5 = scmp.ne.s32.totalorder %s2042_s6, %s2802_s1  ;;  %p2809_p6 = scmp.lt.s32.totalorder %s2042_s6, %s2042_s6 }
 0x8ca   : > { %p2810_p11 = scmp.lt.s32.totalorder %s2802_s1, %s2802_s1 }
 0x8cb   : > { %2513 = dma.vmem_to_hbm [thread:$0]  (%p3837_p0), %s2020_s24, 128, %s3838_s4, [#allocation11]  }
 0x8cc   : > { %p2804_p12 = pnand %p2803_p5, %p3839_p7  ;;  %p2811_p1 = por %p2810_p11, %p2809_p6 }
 0x8ce   : > { %p2805_p4 = pneg %p2804_p12 }
 0x8d0   : > { %p2812_p2 = pnand %p2811_p1, %p2805_p4 }
 0x8d2   : > { %2815 = shalt.err (!%p2812_p2)
}
 0x8d3   : > { %p3840_p3 = pmov %p3837_p0  ;;  %s3841_s17 = sld [smem:[#allocation53_spill]] }
 0x8d4   : > { %s2826_s30 = scalar_lea.vmem %s2031_s16, 128  ;;  %p3842_p9 = pmov %p3837_p0 }
 0x8d5   : > { %p2827_p8 = scmp.ne.s32.totalorder %s2031_s16, %s2826_s30  ;;  %p2833_p0 = scmp.lt.s32.totalorder %s2031_s16, %s2031_s16 }
 0x8d6   : > { %p2834_p5 = scmp.lt.s32.totalorder %s2826_s30, %s2826_s30 }
 0x8d7   : > { %p2828_p10 = pnand %p2827_p8, %p3842_p9 }
 0x8d8   : > { %p2835_p7 = por %p2834_p5, %p2833_p0 }
 0x8d9   : > { %2517 = dma.vmem_to_hbm [thread:$0]  (%p3840_p3), %s2042_s6, 128, %s3841_s17, [#allocation14]  }
 0x8da   : > { %p2829_p13 = pneg %p2828_p10 }
 0x8dc   : > { %p2836_p12 = pnand %p2835_p7, %p2829_p13 }
 0x8de   : > { %2839 = shalt.err (!%p2836_p12)
}
 0x8df   : > { %p3843_p4 = pmov %p3840_p3  ;;  %s3844_s21 = sld [smem:[#allocation52_spill]] }
 0x8e0   : > { %s3017_s23 = smov [#allocation15]   ;;  %s3018_s25 = smov [#allocation16]  }
 0x8e1   : > { %s2052_s24 = sshll.u32 %s3017_s23, 4  ;;  %s2063_s10 = sshll.u32 %s3018_s25, 4  ;;  %s2053_s24 = int_to_ptr.vmem [resolvable:$true] %s2052_s24  ;;  %s2064_s10 = int_to_ptr.vmem [resolvable:$true] %s2063_s10 }
 0x8e2   : > { %s2850_s11 = scalar_lea.vmem %s2053_s24, 128  ;;  %p3845_p11 = pmov %p3840_p3 }
 0x8e3   : > { %p2851_p6 = scmp.ne.s32.totalorder %s2053_s24, %s2850_s11  ;;  %p2857_p3 = scmp.lt.s32.totalorder %s2053_s24, %s2053_s24 }
 0x8e4   : > { %p2858_p8 = scmp.lt.s32.totalorder %s2850_s11, %s2850_s11 }
 0x8e5   : > { %2515 = dma.vmem_to_hbm [thread:$0]  (%p3843_p4), %s2031_s16, 128, %s3844_s21, [#allocation11]  }
 0x8e6   : > { %p2852_p1 = pnand %p2851_p6, %p3845_p11  ;;  %p2859_p9 = por %p2858_p8, %p2857_p3 }
 0x8e8   : > { %p2853_p2 = pneg %p2852_p1 }
 0x8ea   : > { %p2860_p10 = pnand %p2859_p9, %p2853_p2 }
 0x8ec   : > { %2863 = shalt.err (!%p2860_p10)
}
 0x8ed   : > { %p3846_p13 = pmov %p3843_p4  ;;  %s3847_s29 = sld [smem:[#allocation54_spill]] }
 0x8ee   : > { %s2874_s7 = scalar_lea.vmem %s2064_s10, 128  ;;  %p3848_p5 = pmov %p3843_p4 }
 0x8ef   : > { %p2875_p0 = scmp.ne.s32.totalorder %s2064_s10, %s2874_s7  ;;  %p2881_p4 = scmp.lt.s32.totalorder %s2064_s10, %s2064_s10 }
 0x8f0   : > { %p2882_p6 = scmp.lt.s32.totalorder %s2874_s7, %s2874_s7 }
 0x8f1   : > { %p2876_p7 = pnand %p2875_p0, %p3848_p5 }
 0x8f2   : > { %p2883_p11 = por %p2882_p6, %p2881_p4 }
 0x8f3   : > { %2519 = dma.vmem_to_hbm [thread:$0]  (%p3846_p13), %s2053_s24, 128, %s3847_s29, [#allocation14]  }
 0x8f4   : > { %p2877_p12 = pneg %p2876_p7 }
 0x8f6   : > { %p2884_p1 = pnand %p2883_p11, %p2877_p12 }
 0x8f8   : > { %2887 = shalt.err (!%p2884_p1)
}
 0x8f9   : > { %p3849_p2 = pmov %p3848_p5  ;;  %s3850_s6 = sld [smem:[#allocation55_spill]] }
 0x8fa   : > { %s3851_s2 = sld [smem:[#allocation31_spill]]  ;;  %s1993_s16 = sand.u32 1, %s3187_s22  }
 0x8fb   : > { %s3852_s8 = sld [smem:[#allocation56_spill]]  ;;  %s2076_s30 = sshll.u32 %s3832_s9, 4  ;;  %s2077_s30 = int_to_ptr.vmem [resolvable:$true] %s2076_s30 }
 0x8fc   : > { %s1994_s18 = scalar_lea.sflag [#allocation8], %s1993_s16  ;;  %s2898_s20 = scalar_lea.vmem %s2077_s30, 128 }
 0x8fd   : > { %p2899_p3 = scmp.ne.s32.totalorder %s2077_s30, %s2898_s20  ;;  %s3019_s21 = smov [#allocation18]  }
 0x8fe   : > { %s2902_s23 = sshll.u32 %s3019_s21, 4  ;;  %s2903_s23 = int_to_ptr.vmem [resolvable:$false] %s2902_s23 }
 0x8ff   : > { %2521 = dma.vmem_to_hbm [thread:$0]  (%p3849_p2), %s2064_s10, 128, %s3850_s6, [#allocation17]  }
 0x900   : > { %p3853_p8 = scmp.ne.s32.totalorder %s3851_s2, 0  ;;  %s2904_s24 = scalar_lea.vmem %s2903_s23, 256 }
 0x901   : > { %s2074_s17 = scalar_lea.hbm %s3852_s8, %s2354_s0  ;;  %p2905_p13 = scmp.lt.s32.totalorder %s2077_s30, %s2903_s23 }
 0x902   : > { %p2900_p9 = pnand %p2899_p3, %p3853_p8  ;;  %p2906_p0 = scmp.lt.s32.totalorder %s2904_s24, %s2898_s20 }
 0x904   : > { %p2901_p10 = pneg %p2900_p9  ;;  %p2907_p5 = por %p2906_p0, %p2905_p13 }
 0x906   : > { %p2908_p7 = pnand %p2907_p5, %p2901_p10 }
 0x908   : > { %2911 = shalt.err (!%p2908_p7)
}
 0x909   : > { %s2912_s25 = scalar_lea.hbm %s2074_s17, 128  ;;  %s2916_s10 = scalar_lea.hbm %s3852_s8, 384 }
 0x90a   : > { %p2913_p12 = scmp.ne.s32.totalorder %s2074_s17, %s2912_s25  ;;  %p2917_p11 = scmp.lt.s32.totalorder %s2074_s17, %s3852_s8 }
 0x90b   : > { %p2918_p1 = scmp.lt.s32.totalorder %s2916_s10, %s2912_s25 }
 0x90c   : > { %p2914_p4 = pnand %p2913_p12, %p3853_p8 }
 0x90d   : > { %p2919_p2 = por %p2918_p1, %p2917_p11 }
 0x90e   : > { %p2915_p6 = pneg %p2914_p4 }
 0x910   : > { %p2920_p3 = pnand %p2919_p2, %p2915_p6 }
 0x912   : > { %2923 = shalt.err (!%p2920_p3)
}
 0x913   : > { %2522 = dma.vmem_to_hbm [thread:$0]  (%p3853_p8), %s2077_s30, 128, %s2074_s17, %s1994_s18   ;;  %v1955_v31 = vmul.f32 1.442695, %v1954_v18  ;;  %v1982_v32 = vcvt.f32.s32 %v3604_v27  ;;  %v1957_v34 = vld [vmem:[%s3750_s28] sm:$0xff]  ;;  %vm1986_vm7 = vcmp.gt.f32.partialorder %v3598_v19, %v3588_v17 }
 0x914   : > { %v1987_v38 = vld [vmem:[%s3741_s19] sm:$0xff]  ;;  %p3854_p8 = scmp.eq.s32.totalorder %s3187_s22, 2 }
 0x915   : > { %2712 = vpow2.f32 %v1955_v31  ;;  %v1983_v35 = vshll.u32 %v1982_v32, 16 }
 0x922   : > { %v2713_v1 = vpop.eup %2712 }
 0x923   : > { %v1958_v40 = vmul.f32 %v2713_v1, %v1957_v34 }
 0x93c   : > { %v1980_v33 = vpop.xlane.xlu0 %1979 }
 0x93d   : > { %v1981_v36 = vcvt.f32.s32 %v1980_v33 }
 0x93f   : > { %v1984_v39 = vadd.s32 %v1983_v35, %v1981_v36 }
 0x940   : > { %v1960_v41 = vpop.xlane.xlu0 %1959 }
 0x941   : > { %v1988_v42 = vsel %vm1986_vm7, %v1984_v39, %v1987_v38  ;;  %v1961_v44 = vadd.f32 %v1960_v41, %v1958_v40 }
 0x942   : > { %1989 = vst.msk [vmem:[%s3741_s19] sm:$0xff] %vm1962_vm4, %v1988_v42 }
 0x943   : > { %1963 = vst.msk [vmem:[%s3750_s28] sm:$0xff] %vm1962_vm4, %v1961_v44 }
 0x944   : > { %2947 = dma.done.wait (%p3854_p8), [#allocation8], 128   ;;  %p3855_p9 = pmov %p3854_p8 }
 0x945   : > { %p3856_p10 = pmov %p3854_p8 }
 0x946   : > { %2949 = vsyncadd (%p3855_p9), [#allocation8], 4294967168 }
 0x947   : > { %2951 = dma.done.wait (%p3856_p10), [#allocation11], 256   ;;  %p3857_p13 = pmov %p3854_p8 }
 0x948   : > { %p3858_p0 = pmov %p3854_p8 }
 0x949   : > { %2953 = vsyncadd (%p3857_p13), [#allocation11], 4294967040 }
 0x94a   : > { %2955 = dma.done.wait (%p3858_p0), [#allocation14], 256   ;;  %p3859_p5 = pmov %p3858_p0 }
 0x94b   : > { %p3860_p7 = pmov %p3858_p0 }
 0x94c   : > { %2957 = vsyncadd (%p3859_p5), [#allocation14], 4294967040 }
 0x94d   : > { %2959 = dma.done.wait (%p3860_p7), [#allocation17], 128   ;;  %p3861_p12 = pmov %p3858_p0 }
 0x94f   : > { %2961 = vsyncadd (%p3861_p12), [#allocation17], 4294967168 }
 0x950 PF: > { %s3862_s1 = sld [smem:[#allocation28_spill]] }
 0x951   : > { %s3863_s3 = sld [smem:[#allocation32_spill]] }
 0x956   : > { %p2557_p4 = scmp.ge.s32.totalorder %s3862_s1, 2  ;;  %s3864_s17 = sadd.s32 4294967294, %s3862_s1  }
 0x957   : > { %s2127_s30 = sand.u32 1, %s3864_s17   ;;  %p3865_p6 = scmp.ne.s32.totalorder %s3863_s3, 0 }
 0x958   : > { %s2128_s18 = scalar_lea.sflag [#allocation8], %s2127_s30 }
 0x959   : > { %p2541_p11 = pnand %p2557_p4, %p3865_p6 }
 0x95b   : > { %p2542_p1 = pneg %p2541_p11 }
 0x95d   : > { %2963 = dma.done.wait (%p2542_p1), %s2128_s18, 128  }
 0x95e   : > { %2965 = vsyncadd (%p2542_p1), %s2128_s18, 4294967168  ;;  %s3866_s11 = sld [smem:[#allocation29_spill]] }
 0x95f   : > { %s3867_s6 = sld [smem:[#allocation26_spill]] }
 0x960   : > { %s3868_s10 = sld [smem:[#allocation27_spill]] }
 0x961   : > { %s3869_s0 = sld [smem:[#allocation30_spill]] }
 0x964   : > { %p49_p2 = scmp.ge.s32.totalorder %s3866_s11, 5  }
 0x966   :  { %51 = sbr.rel (!%p49_p2) target bundleno = 51 (0x33), region = 223 }
 0x96b   :  { %2133 = vsyncpa [#allocation7], 1 }
 0x96c   :  { %2135 = vsyncpa [#allocation7 + $0x1], 1 }
 0x96d   :  { %2136 = vsyncpa [#allocation8], 1 }
 0x96e   :  { %2138 = vsyncpa [#allocation8 + $0x1], 1 }
 0x96f   :  { %2139 = vsyncpa [#allocation11], 1 }
 0x970   :  { %2140 = vsyncpa [#allocation14], 1 }
 0x971   :  { %2141 = vsyncpa [#allocation17], 1 }

</bundles_post_ra>
